<compile_context>
chip_gen: v5e
topology: v5e:2x2
jax: 0.10.0
libtpu: 0.0.40
codegen_flags: <defaults>
</compile_context>

<pallas_src>
import jax
import jax.numpy as jnp
from jax.experimental import pallas as pl
from jax.experimental.pallas import tpu as pltpu

# ----------------------------- config ---------------------------------------
CONFIG = dict(
    n_inputs=4,        # features per pixel per timestep
    n_latent=32,       # n_states (ODE state size)
    n_hidden=32,       # ODE dynamics MLP hidden width
    n_layers=2,        # ODE dynamics MLP depth (input + 1 hidden + output)
    n_encodings=32,    # encoder output size
    n_outputs=8,       # classifier outputs per pixel
    ode_solver="euler",
    step_size=0.1,
    stability_init=True,
    activation="tanh",
)

N_PIXELS = 1024        # e.g. a 4-image batch of 16x16 frames, flattened to pixels
SEQ_LEN = 8            # timesteps per pixel
TILE_N = 256           # pixels per grid step (multiple of 256 -> good on v6e/v7x MXU)


# ----------------------------- kernel ---------------------------------------
def _pixel_classifier_kernel(
    x_ref,                       # (T, n_inputs, TILE_N)      pixels on lanes
    w0z_ref,                     # (n_hidden, n_states)       = w0[:ns].T
    wu_ref,                      # (n_hidden, n_inputs)       = (w_enc @ w0[ns:]).T
    bu_ref,                      # (n_hidden, 1)              = (b_enc @ w0[ns:] + b0).T
    w1_ref, b1_ref,              # (n_hidden, n_hidden), (n_hidden, 1)
    w2h_ref, b2h_ref,            # (n_states, n_hidden), (n_states, 1)   (pre-scaled by h)
    wd1_ref, bd1_ref,            # (n_states//2, n_states), (n_states//2, 1)
    wd2_ref, bd2_ref,            # (n_outputs, n_states//2), (n_outputs, 1)
    out_ref,                     # (n_outputs, TILE_N)        lane-dense output slab
):
    f32 = jnp.float32
    t_len = x_ref.shape[0]
    tn = out_ref.shape[-1]
    n_states = w2h_ref.shape[0]
    n_hidden = w1_ref.shape[0]

    # Hoist bias broadcasts out of the unrolled Euler loop (no broadcast_in_dim
    # re-emitted per iteration).
    bu_b = jnp.broadcast_to(bu_ref[...], (n_hidden, tn))
    b1_b = jnp.broadcast_to(b1_ref[...], (n_hidden, tn))
    b2h_b = jnp.broadcast_to(b2h_ref[...], (n_states, tn))

    # Euler integration of the NeuralODE, fully unrolled (T is small & static).
    # Loop body: 3 MXU dots + 2 EUP tanh, no concat, no encoder pass.
    z = jnp.zeros((n_states, tn), f32)
    for t in range(t_len):
        x_t = x_ref[t]                                        # (n_inputs, TILE_N)
        pre0 = (jnp.dot(w0z_ref[...], z, preferred_element_type=f32)
                + jnp.dot(wu_ref[...], x_t, preferred_element_type=f32)
                + bu_b)
        h1 = jnp.tanh(pre0)
        h2 = jnp.tanh(jnp.dot(w1_ref[...], h1, preferred_element_type=f32) + b1_b)
        z = z + jnp.dot(w2h_ref[...], h2, preferred_element_type=f32) + b2h_b

    # Decoder: Linear -> ReLU -> Linear (still pixels-on-lanes).
    d1 = jnp.maximum(
        jnp.dot(wd1_ref[...], z, preferred_element_type=f32) + bd1_ref[...], 0.0)
    out_ref[...] = (
        jnp.dot(wd2_ref[...], d1, preferred_element_type=f32) + bd2_ref[...])


# ----------------------------- wrapper ---------------------------------------
def pixel_level_classifier(x, params, config, *, tile_n=TILE_N):
    """x: (n_pixels, T, n_inputs) channels-last -> (n_pixels, n_outputs)."""
    n_pix, t_len, n_in = x.shape
    ns = config["n_latent"]
    n_out = config["n_outputs"]
    f32 = jnp.float32
    h = jnp.float32(config["step_size"])
    hp = jax.lax.Precision.HIGHEST      # do the weight fold in full f32

    w0 = params["w0"].astype(f32)
    w0_z, w0_u = w0[:ns], w0[ns:]
    # Fold the encoder into the first dynamics layer (exact linear-algebra identity):
    #   [z, x@w_enc + b_enc] @ w0 + b0
    #       == z @ w0_z + x @ (w_enc @ w0_u) + (b_enc @ w0_u + b0)
    w_fold = jnp.dot(params["w_enc"].astype(f32), w0_u, precision=hp)
    b_fold = jnp.dot(params["b_enc"].astype(f32), w0_u, precision=hp) + params["b0"]

    # Transposed ("pixels on the lane axis") weight set; Euler h folded into w2/b2.
    weights = tuple(
        jnp.asarray(w, f32)
        for w in (
            w0_z.T, w_fold.T, b_fold.T,
            params["w1"].T, params["b1"].T,
            (h * params["w2"]).T, (h * params["b2"]).T,
            params["wd1"].T, params["bd1"].T,
            params["wd2"].T, params["bd2"].T,
        )
    )

    # Pad pixel count to a tile multiple and put pixels on the lane (last) axis.
    n_pad = (-n_pix) % tile_n
    if n_pad:
        x = jnp.pad(x, ((0, n_pad), (0, 0), (0, 0)))
    n_tot = n_pix + n_pad
    x_lanes = jnp.transpose(x.astype(f32), (1, 2, 0))         # (T, n_in, n_tot)

    def full_spec(arr):
        # Weights: whole (tiny) array resident in VMEM, same block every grid step.
        return pl.BlockSpec(arr.shape, lambda i: (0,) * arr.ndim)

    out = pl.pallas_call(
        _pixel_classifier_kernel,
        out_shape=jax.ShapeDtypeStruct((n_out, n_tot), f32),
        grid_spec=pltpu.PrefetchScalarGridSpec(
            num_scalar_prefetch=0,
            grid=(n_tot // tile_n,),
            in_specs=[pl.BlockSpec((t_len, n_in, tile_n), lambda i: (0, 0, i))]
                     + [full_spec(w) for w in weights],
            out_specs=pl.BlockSpec((n_out, tile_n), lambda i: (0, i)),
        ),
        compiler_params=pltpu.CompilerParams(
            dimension_semantics=("parallel",)),
    )(x_lanes, *weights)

    return out[:, :n_pix].T            # back to (n_pixels, n_outputs)


# ----------------------------- reference -------------------------------------
def reference_forward(x, params, config):
    """Spec-faithful (unfolded, untransposed) forward in plain JAX, full-f32 matmuls."""
    hp = jax.lax.Precision.HIGHEST
    h = config["step_size"]
    u = jnp.einsum("ntd,de->nte", x, params["w_enc"], precision=hp) + params["b_enc"]
    z = jnp.zeros((x.shape[0], config["n_latent"]), jnp.float32)
    for t in range(x.shape[1]):
        inp = jnp.concatenate([z, u[:, t, :]], axis=-1)
        h1 = jnp.tanh(jnp.dot(inp, params["w0"], precision=hp) + params["b0"])
        h2 = jnp.tanh(jnp.dot(h1, params["w1"], precision=hp) + params["b1"])
        dz = jnp.dot(h2, params["w2"], precision=hp) + params["b2"]
        z = z + h * dz
    d1 = jnp.maximum(jnp.dot(z, params["wd1"], precision=hp) + params["bd1"], 0.0)
    return jnp.dot(d1, params["wd2"], precision=hp) + params["bd2"]


# ----------------------------- param init ------------------------------------
def init_params(key, config):
    n_in = config["n_inputs"]
    n_enc = config["n_encodings"]
    ns = config["n_latent"]
    nh = config["n_hidden"]
    n_out = config["n_outputs"]
    keys = jax.random.split(key, 12)

    def lin(k, fan_in, fan_out, scale=None):
        s = scale if scale is not None else (1.0 / jnp.sqrt(fan_in))
        return s * jax.random.normal(k, (fan_in, fan_out), jnp.float32)

    # stability_init=True -> last dynamics layer initialized small
    stab_scale = 0.01 if config["stability_init"] else None
    return dict(
        w_enc=lin(keys[0], n_in, n_enc),
        b_enc=0.01 * jax.random.normal(keys[1], (1, n_enc), jnp.float32),
        w0=lin(keys[2], ns + n_enc, nh),
        b0=jnp.zeros((1, nh), jnp.float32),
        w1=lin(keys[3], nh, nh),
        b1=jnp.zeros((1, nh), jnp.float32),
        w2=lin(keys[4], nh, ns, scale=stab_scale),
        b2=jnp.zeros((1, ns), jnp.float32),
        wd1=lin(keys[5], ns, ns // 2),
        bd1=0.01 * jax.random.normal(keys[6], (1, ns // 2), jnp.float32),
        wd2=lin(keys[7], ns // 2, n_out),
        bd2=0.01 * jax.random.normal(keys[8], (1, n_out), jnp.float32),
    )


# ----------------------------- main -------------------------------------------
if __name__ == "__main__":
    key = jax.random.PRNGKey(0)
    kx, kp = jax.random.split(key)

    x = jax.random.normal(
        kx, (N_PIXELS, SEQ_LEN, CONFIG["n_inputs"]), jnp.float32)
    params = init_params(kp, CONFIG)

    fwd = jax.jit(lambda xx, pp: pixel_level_classifier(xx, pp, CONFIG))
    y = jax.block_until_ready(fwd(x, params))

    y_ref = reference_forward(x, params, CONFIG)
    assert y.shape == (N_PIXELS, CONFIG["n_outputs"])
    # Tolerance: the kernel's matmuls run at the TPU default matmul precision
    # (bf16 multiplies, f32 accumulation) and the encoder fold re-associates one
    # matmul, so truncation no longer cancels bit-for-bit against the
    # HIGHEST-precision reference; real structural bugs show up orders of
    # magnitude larger than this bound.
    err = float(jnp.max(jnp.abs(y - y_ref)))
    assert jnp.allclose(y, y_ref, atol=2e-3, rtol=1e-2), err

    print("KERNEL_OK")
</pallas_src>

<mosaic_0001>
module attributes {stable_mosaic.version = 11 : i64} {
  func.func @_pixel_classifier_kernel(%arg0: i32, %arg1: memref<8x4x256xf32, #tpu.memory_space<vmem>>, %arg2: memref<32x32xf32, #tpu.memory_space<vmem>>, %arg3: memref<32x4xf32, #tpu.memory_space<vmem>>, %arg4: memref<32x1xf32, #tpu.memory_space<vmem>>, %arg5: memref<32x32xf32, #tpu.memory_space<vmem>>, %arg6: memref<32x1xf32, #tpu.memory_space<vmem>>, %arg7: memref<32x32xf32, #tpu.memory_space<vmem>>, %arg8: memref<32x1xf32, #tpu.memory_space<vmem>>, %arg9: memref<16x32xf32, #tpu.memory_space<vmem>>, %arg10: memref<16x1xf32, #tpu.memory_space<vmem>>, %arg11: memref<8x16xf32, #tpu.memory_space<vmem>>, %arg12: memref<8x1xf32, #tpu.memory_space<vmem>>, %arg13: memref<8x256xf32, #tpu.memory_space<vmem>>) attributes {dimension_semantics = [#tpu.dimension_semantics<parallel>], iteration_bounds = array<i64: 4>, scalar_prefetch = 0 : i64, scratch_operands = 0 : i64, tpu.core_type = #tpu.core_type<tc>, window_params = [{transform_indices = @transform_0, window_bounds = array<i64: 8, 4, 256>}, {pipeline_mode = #tpu.pipeline_mode<synchronous>, transform_indices = @transform_1, window_bounds = array<i64: 32, 32>}, {pipeline_mode = #tpu.pipeline_mode<synchronous>, transform_indices = @transform_2, window_bounds = array<i64: 32, 4>}, {pipeline_mode = #tpu.pipeline_mode<synchronous>, transform_indices = @transform_3, window_bounds = array<i64: 32, 1>}, {pipeline_mode = #tpu.pipeline_mode<synchronous>, transform_indices = @transform_4, window_bounds = array<i64: 32, 32>}, {pipeline_mode = #tpu.pipeline_mode<synchronous>, transform_indices = @transform_5, window_bounds = array<i64: 32, 1>}, {pipeline_mode = #tpu.pipeline_mode<synchronous>, transform_indices = @transform_6, window_bounds = array<i64: 32, 32>}, {pipeline_mode = #tpu.pipeline_mode<synchronous>, transform_indices = @transform_7, window_bounds = array<i64: 32, 1>}, {pipeline_mode = #tpu.pipeline_mode<synchronous>, transform_indices = @transform_8, window_bounds = array<i64: 16, 32>}, {pipeline_mode = #tpu.pipeline_mode<synchronous>, transform_indices = @transform_9, window_bounds = array<i64: 16, 1>}, {pipeline_mode = #tpu.pipeline_mode<synchronous>, transform_indices = @transform_10, window_bounds = array<i64: 8, 16>}, {pipeline_mode = #tpu.pipeline_mode<synchronous>, transform_indices = @transform_11, window_bounds = array<i64: 8, 1>}, {transform_indices = @transform_12, window_bounds = array<i64: 8, 256>}]} {
    %c0 = arith.constant 0 : index
    %c0_0 = arith.constant 0 : index
    %0 = vector.load %arg4[%c0, %c0_0] : memref<32x1xf32, #tpu.memory_space<vmem>>, vector<32x1xf32>
    %1 = vector.shape_cast %0 : vector<32x1xf32> to vector<32x1xf32>
    %2 = vector.broadcast %1 : vector<32x1xf32> to vector<32x256xf32>
    %c0_1 = arith.constant 0 : index
    %c0_2 = arith.constant 0 : index
    %3 = vector.load %arg6[%c0_1, %c0_2] : memref<32x1xf32, #tpu.memory_space<vmem>>, vector<32x1xf32>
    %4 = vector.shape_cast %3 : vector<32x1xf32> to vector<32x1xf32>
    %5 = vector.broadcast %4 : vector<32x1xf32> to vector<32x256xf32>
    %c0_3 = arith.constant 0 : index
    %c0_4 = arith.constant 0 : index
    %6 = vector.load %arg8[%c0_3, %c0_4] : memref<32x1xf32, #tpu.memory_space<vmem>>, vector<32x1xf32>
    %7 = vector.shape_cast %6 : vector<32x1xf32> to vector<32x1xf32>
    %8 = vector.broadcast %7 : vector<32x1xf32> to vector<32x256xf32>
    %cst = arith.constant 0.000000e+00 : f32
    %9 = vector.broadcast %cst : f32 to vector<32x256xf32>
    %c0_5 = arith.constant 0 : index
    %c0_6 = arith.constant 0 : index
    %c0_7 = arith.constant 0 : index
    %10 = vector.load %arg1[%c0_5, %c0_6, %c0_7] : memref<8x4x256xf32, #tpu.memory_space<vmem>>, vector<1x4x256xf32>
    %11 = vector.shape_cast %10 : vector<1x4x256xf32> to vector<4x256xf32>
    %c0_8 = arith.constant 0 : index
    %c0_9 = arith.constant 0 : index
    %12 = vector.load %arg2[%c0_8, %c0_9] : memref<32x32xf32, #tpu.memory_space<vmem>>, vector<32x32xf32>
    %cst_10 = arith.constant dense<0.000000e+00> : vector<32x256xf32>
    %13 = tpu.matmul %12, %9, %cst_10 {dimension_numbers = #tpu.dot_dimension_numbers<[1], [0], [0], [1], [0, 0, 1, 1], [], []>} : vector<32x32xf32>, vector<32x256xf32>, vector<32x256xf32> -> vector<32x256xf32>
    %c0_11 = arith.constant 0 : index
    %c0_12 = arith.constant 0 : index
    %14 = vector.load %arg3[%c0_11, %c0_12] : memref<32x4xf32, #tpu.memory_space<vmem>>, vector<32x4xf32>
    %cst_13 = arith.constant dense<0.000000e+00> : vector<32x256xf32>
    %15 = tpu.matmul %14, %11, %cst_13 {dimension_numbers = #tpu.dot_dimension_numbers<[1], [0], [0], [1], [0, 0, 1, 1], [], []>} : vector<32x4xf32>, vector<4x256xf32>, vector<32x256xf32> -> vector<32x256xf32>
    %16 = arith.addf %13, %15 : vector<32x256xf32>
    %17 = arith.addf %16, %2 : vector<32x256xf32>
    %18 = math.tanh %17 : vector<32x256xf32>
    %c0_14 = arith.constant 0 : index
    %c0_15 = arith.constant 0 : index
    %19 = vector.load %arg5[%c0_14, %c0_15] : memref<32x32xf32, #tpu.memory_space<vmem>>, vector<32x32xf32>
    %cst_16 = arith.constant dense<0.000000e+00> : vector<32x256xf32>
    %20 = tpu.matmul %19, %18, %cst_16 {dimension_numbers = #tpu.dot_dimension_numbers<[1], [0], [0], [1], [0, 0, 1, 1], [], []>} : vector<32x32xf32>, vector<32x256xf32>, vector<32x256xf32> -> vector<32x256xf32>
    %21 = arith.addf %20, %5 : vector<32x256xf32>
    %22 = math.tanh %21 : vector<32x256xf32>
    %c0_17 = arith.constant 0 : index
    %c0_18 = arith.constant 0 : index
    %23 = vector.load %arg7[%c0_17, %c0_18] : memref<32x32xf32, #tpu.memory_space<vmem>>, vector<32x32xf32>
    %cst_19 = arith.constant dense<0.000000e+00> : vector<32x256xf32>
    %24 = tpu.matmul %23, %22, %cst_19 {dimension_numbers = #tpu.dot_dimension_numbers<[1], [0], [0], [1], [0, 0, 1, 1], [], []>} : vector<32x32xf32>, vector<32x256xf32>, vector<32x256xf32> -> vector<32x256xf32>
    %25 = arith.addf %9, %24 : vector<32x256xf32>
    %26 = arith.addf %25, %8 : vector<32x256xf32>
    %c1 = arith.constant 1 : index
    %c0_20 = arith.constant 0 : index
    %c0_21 = arith.constant 0 : index
    %27 = vector.load %arg1[%c1, %c0_20, %c0_21] : memref<8x4x256xf32, #tpu.memory_space<vmem>>, vector<1x4x256xf32>
    %28 = vector.shape_cast %27 : vector<1x4x256xf32> to vector<4x256xf32>
    %c0_22 = arith.constant 0 : index
    %c0_23 = arith.constant 0 : index
    %29 = vector.load %arg2[%c0_22, %c0_23] : memref<32x32xf32, #tpu.memory_space<vmem>>, vector<32x32xf32>
    %cst_24 = arith.constant dense<0.000000e+00> : vector<32x256xf32>
    %30 = tpu.matmul %29, %26, %cst_24 {dimension_numbers = #tpu.dot_dimension_numbers<[1], [0], [0], [1], [0, 0, 1, 1], [], []>} : vector<32x32xf32>, vector<32x256xf32>, vector<32x256xf32> -> vector<32x256xf32>
    %c0_25 = arith.constant 0 : index
    %c0_26 = arith.constant 0 : index
    %31 = vector.load %arg3[%c0_25, %c0_26] : memref<32x4xf32, #tpu.memory_space<vmem>>, vector<32x4xf32>
    %cst_27 = arith.constant dense<0.000000e+00> : vector<32x256xf32>
    %32 = tpu.matmul %31, %28, %cst_27 {dimension_numbers = #tpu.dot_dimension_numbers<[1], [0], [0], [1], [0, 0, 1, 1], [], []>} : vector<32x4xf32>, vector<4x256xf32>, vector<32x256xf32> -> vector<32x256xf32>
    %33 = arith.addf %30, %32 : vector<32x256xf32>
    %34 = arith.addf %33, %2 : vector<32x256xf32>
    %35 = math.tanh %34 : vector<32x256xf32>
    %c0_28 = arith.constant 0 : index
    %c0_29 = arith.constant 0 : index
    %36 = vector.load %arg5[%c0_28, %c0_29] : memref<32x32xf32, #tpu.memory_space<vmem>>, vector<32x32xf32>
    %cst_30 = arith.constant dense<0.000000e+00> : vector<32x256xf32>
    %37 = tpu.matmul %36, %35, %cst_30 {dimension_numbers = #tpu.dot_dimension_numbers<[1], [0], [0], [1], [0, 0, 1, 1], [], []>} : vector<32x32xf32>, vector<32x256xf32>, vector<32x256xf32> -> vector<32x256xf32>
    %38 = arith.addf %37, %5 : vector<32x256xf32>
    %39 = math.tanh %38 : vector<32x256xf32>
    %c0_31 = arith.constant 0 : index
    %c0_32 = arith.constant 0 : index
    %40 = vector.load %arg7[%c0_31, %c0_32] : memref<32x32xf32, #tpu.memory_space<vmem>>, vector<32x32xf32>
    %cst_33 = arith.constant dense<0.000000e+00> : vector<32x256xf32>
    %41 = tpu.matmul %40, %39, %cst_33 {dimension_numbers = #tpu.dot_dimension_numbers<[1], [0], [0], [1], [0, 0, 1, 1], [], []>} : vector<32x32xf32>, vector<32x256xf32>, vector<32x256xf32> -> vector<32x256xf32>
    %42 = arith.addf %26, %41 : vector<32x256xf32>
    %43 = arith.addf %42, %8 : vector<32x256xf32>
    %c2 = arith.constant 2 : index
    %c0_34 = arith.constant 0 : index
    %c0_35 = arith.constant 0 : index
    %44 = vector.load %arg1[%c2, %c0_34, %c0_35] : memref<8x4x256xf32, #tpu.memory_space<vmem>>, vector<1x4x256xf32>
    %45 = vector.shape_cast %44 : vector<1x4x256xf32> to vector<4x256xf32>
    %c0_36 = arith.constant 0 : index
    %c0_37 = arith.constant 0 : index
    %46 = vector.load %arg2[%c0_36, %c0_37] : memref<32x32xf32, #tpu.memory_space<vmem>>, vector<32x32xf32>
    %cst_38 = arith.constant dense<0.000000e+00> : vector<32x256xf32>
    %47 = tpu.matmul %46, %43, %cst_38 {dimension_numbers = #tpu.dot_dimension_numbers<[1], [0], [0], [1], [0, 0, 1, 1], [], []>} : vector<32x32xf32>, vector<32x256xf32>, vector<32x256xf32> -> vector<32x256xf32>
    %c0_39 = arith.constant 0 : index
    %c0_40 = arith.constant 0 : index
    %48 = vector.load %arg3[%c0_39, %c0_40] : memref<32x4xf32, #tpu.memory_space<vmem>>, vector<32x4xf32>
    %cst_41 = arith.constant dense<0.000000e+00> : vector<32x256xf32>
    %49 = tpu.matmul %48, %45, %cst_41 {dimension_numbers = #tpu.dot_dimension_numbers<[1], [0], [0], [1], [0, 0, 1, 1], [], []>} : vector<32x4xf32>, vector<4x256xf32>, vector<32x256xf32> -> vector<32x256xf32>
    %50 = arith.addf %47, %49 : vector<32x256xf32>
    %51 = arith.addf %50, %2 : vector<32x256xf32>
    %52 = math.tanh %51 : vector<32x256xf32>
    %c0_42 = arith.constant 0 : index
    %c0_43 = arith.constant 0 : index
    %53 = vector.load %arg5[%c0_42, %c0_43] : memref<32x32xf32, #tpu.memory_space<vmem>>, vector<32x32xf32>
    %cst_44 = arith.constant dense<0.000000e+00> : vector<32x256xf32>
    %54 = tpu.matmul %53, %52, %cst_44 {dimension_numbers = #tpu.dot_dimension_numbers<[1], [0], [0], [1], [0, 0, 1, 1], [], []>} : vector<32x32xf32>, vector<32x256xf32>, vector<32x256xf32> -> vector<32x256xf32>
    %55 = arith.addf %54, %5 : vector<32x256xf32>
    %56 = math.tanh %55 : vector<32x256xf32>
    %c0_45 = arith.constant 0 : index
    %c0_46 = arith.constant 0 : index
    %57 = vector.load %arg7[%c0_45, %c0_46] : memref<32x32xf32, #tpu.memory_space<vmem>>, vector<32x32xf32>
    %cst_47 = arith.constant dense<0.000000e+00> : vector<32x256xf32>
    %58 = tpu.matmul %57, %56, %cst_47 {dimension_numbers = #tpu.dot_dimension_numbers<[1], [0], [0], [1], [0, 0, 1, 1], [], []>} : vector<32x32xf32>, vector<32x256xf32>, vector<32x256xf32> -> vector<32x256xf32>
    %59 = arith.addf %43, %58 : vector<32x256xf32>
    %60 = arith.addf %59, %8 : vector<32x256xf32>
    %c3 = arith.constant 3 : index
    %c0_48 = arith.constant 0 : index
    %c0_49 = arith.constant 0 : index
    %61 = vector.load %arg1[%c3, %c0_48, %c0_49] : memref<8x4x256xf32, #tpu.memory_space<vmem>>, vector<1x4x256xf32>
    %62 = vector.shape_cast %61 : vector<1x4x256xf32> to vector<4x256xf32>
    %c0_50 = arith.constant 0 : index
    %c0_51 = arith.constant 0 : index
    %63 = vector.load %arg2[%c0_50, %c0_51] : memref<32x32xf32, #tpu.memory_space<vmem>>, vector<32x32xf32>
    %cst_52 = arith.constant dense<0.000000e+00> : vector<32x256xf32>
    %64 = tpu.matmul %63, %60, %cst_52 {dimension_numbers = #tpu.dot_dimension_numbers<[1], [0], [0], [1], [0, 0, 1, 1], [], []>} : vector<32x32xf32>, vector<32x256xf32>, vector<32x256xf32> -> vector<32x256xf32>
    %c0_53 = arith.constant 0 : index
    %c0_54 = arith.constant 0 : index
    %65 = vector.load %arg3[%c0_53, %c0_54] : memref<32x4xf32, #tpu.memory_space<vmem>>, vector<32x4xf32>
    %cst_55 = arith.constant dense<0.000000e+00> : vector<32x256xf32>
    %66 = tpu.matmul %65, %62, %cst_55 {dimension_numbers = #tpu.dot_dimension_numbers<[1], [0], [0], [1], [0, 0, 1, 1], [], []>} : vector<32x4xf32>, vector<4x256xf32>, vector<32x256xf32> -> vector<32x256xf32>
    %67 = arith.addf %64, %66 : vector<32x256xf32>
    %68 = arith.addf %67, %2 : vector<32x256xf32>
    %69 = math.tanh %68 : vector<32x256xf32>
    %c0_56 = arith.constant 0 : index
    %c0_57 = arith.constant 0 : index
    %70 = vector.load %arg5[%c0_56, %c0_57] : memref<32x32xf32, #tpu.memory_space<vmem>>, vector<32x32xf32>
    %cst_58 = arith.constant dense<0.000000e+00> : vector<32x256xf32>
    %71 = tpu.matmul %70, %69, %cst_58 {dimension_numbers = #tpu.dot_dimension_numbers<[1], [0], [0], [1], [0, 0, 1, 1], [], []>} : vector<32x32xf32>, vector<32x256xf32>, vector<32x256xf32> -> vector<32x256xf32>
    %72 = arith.addf %71, %5 : vector<32x256xf32>
    %73 = math.tanh %72 : vector<32x256xf32>
    %c0_59 = arith.constant 0 : index
    %c0_60 = arith.constant 0 : index
    %74 = vector.load %arg7[%c0_59, %c0_60] : memref<32x32xf32, #tpu.memory_space<vmem>>, vector<32x32xf32>
    %cst_61 = arith.constant dense<0.000000e+00> : vector<32x256xf32>
    %75 = tpu.matmul %74, %73, %cst_61 {dimension_numbers = #tpu.dot_dimension_numbers<[1], [0], [0], [1], [0, 0, 1, 1], [], []>} : vector<32x32xf32>, vector<32x256xf32>, vector<32x256xf32> -> vector<32x256xf32>
    %76 = arith.addf %60, %75 : vector<32x256xf32>
    %77 = arith.addf %76, %8 : vector<32x256xf32>
    %c4 = arith.constant 4 : index
    %c0_62 = arith.constant 0 : index
    %c0_63 = arith.constant 0 : index
    %78 = vector.load %arg1[%c4, %c0_62, %c0_63] : memref<8x4x256xf32, #tpu.memory_space<vmem>>, vector<1x4x256xf32>
    %79 = vector.shape_cast %78 : vector<1x4x256xf32> to vector<4x256xf32>
    %c0_64 = arith.constant 0 : index
    %c0_65 = arith.constant 0 : index
    %80 = vector.load %arg2[%c0_64, %c0_65] : memref<32x32xf32, #tpu.memory_space<vmem>>, vector<32x32xf32>
    %cst_66 = arith.constant dense<0.000000e+00> : vector<32x256xf32>
    %81 = tpu.matmul %80, %77, %cst_66 {dimension_numbers = #tpu.dot_dimension_numbers<[1], [0], [0], [1], [0, 0, 1, 1], [], []>} : vector<32x32xf32>, vector<32x256xf32>, vector<32x256xf32> -> vector<32x256xf32>
    %c0_67 = arith.constant 0 : index
    %c0_68 = arith.constant 0 : index
    %82 = vector.load %arg3[%c0_67, %c0_68] : memref<32x4xf32, #tpu.memory_space<vmem>>, vector<32x4xf32>
    %cst_69 = arith.constant dense<0.000000e+00> : vector<32x256xf32>
    %83 = tpu.matmul %82, %79, %cst_69 {dimension_numbers = #tpu.dot_dimension_numbers<[1], [0], [0], [1], [0, 0, 1, 1], [], []>} : vector<32x4xf32>, vector<4x256xf32>, vector<32x256xf32> -> vector<32x256xf32>
    %84 = arith.addf %81, %83 : vector<32x256xf32>
    %85 = arith.addf %84, %2 : vector<32x256xf32>
    %86 = math.tanh %85 : vector<32x256xf32>
    %c0_70 = arith.constant 0 : index
    %c0_71 = arith.constant 0 : index
    %87 = vector.load %arg5[%c0_70, %c0_71] : memref<32x32xf32, #tpu.memory_space<vmem>>, vector<32x32xf32>
    %cst_72 = arith.constant dense<0.000000e+00> : vector<32x256xf32>
    %88 = tpu.matmul %87, %86, %cst_72 {dimension_numbers = #tpu.dot_dimension_numbers<[1], [0], [0], [1], [0, 0, 1, 1], [], []>} : vector<32x32xf32>, vector<32x256xf32>, vector<32x256xf32> -> vector<32x256xf32>
    %89 = arith.addf %88, %5 : vector<32x256xf32>
    %90 = math.tanh %89 : vector<32x256xf32>
    %c0_73 = arith.constant 0 : index
    %c0_74 = arith.constant 0 : index
    %91 = vector.load %arg7[%c0_73, %c0_74] : memref<32x32xf32, #tpu.memory_space<vmem>>, vector<32x32xf32>
    %cst_75 = arith.constant dense<0.000000e+00> : vector<32x256xf32>
    %92 = tpu.matmul %91, %90, %cst_75 {dimension_numbers = #tpu.dot_dimension_numbers<[1], [0], [0], [1], [0, 0, 1, 1], [], []>} : vector<32x32xf32>, vector<32x256xf32>, vector<32x256xf32> -> vector<32x256xf32>
    %93 = arith.addf %77, %92 : vector<32x256xf32>
    %94 = arith.addf %93, %8 : vector<32x256xf32>
    %c5 = arith.constant 5 : index
    %c0_76 = arith.constant 0 : index
    %c0_77 = arith.constant 0 : index
    %95 = vector.load %arg1[%c5, %c0_76, %c0_77] : memref<8x4x256xf32, #tpu.memory_space<vmem>>, vector<1x4x256xf32>
    %96 = vector.shape_cast %95 : vector<1x4x256xf32> to vector<4x256xf32>
    %c0_78 = arith.constant 0 : index
    %c0_79 = arith.constant 0 : index
    %97 = vector.load %arg2[%c0_78, %c0_79] : memref<32x32xf32, #tpu.memory_space<vmem>>, vector<32x32xf32>
    %cst_80 = arith.constant dense<0.000000e+00> : vector<32x256xf32>
    %98 = tpu.matmul %97, %94, %cst_80 {dimension_numbers = #tpu.dot_dimension_numbers<[1], [0], [0], [1], [0, 0, 1, 1], [], []>} : vector<32x32xf32>, vector<32x256xf32>, vector<32x256xf32> -> vector<32x256xf32>
    %c0_81 = arith.constant 0 : index
    %c0_82 = arith.constant 0 : index
    %99 = vector.load %arg3[%c0_81, %c0_82] : memref<32x4xf32, #tpu.memory_space<vmem>>, vector<32x4xf32>
    %cst_83 = arith.constant dense<0.000000e+00> : vector<32x256xf32>
    %100 = tpu.matmul %99, %96, %cst_83 {dimension_numbers = #tpu.dot_dimension_numbers<[1], [0], [0], [1], [0, 0, 1, 1], [], []>} : vector<32x4xf32>, vector<4x256xf32>, vector<32x256xf32> -> vector<32x256xf32>
    %101 = arith.addf %98, %100 : vector<32x256xf32>
    %102 = arith.addf %101, %2 : vector<32x256xf32>
    %103 = math.tanh %102 : vector<32x256xf32>
    %c0_84 = arith.constant 0 : index
    %c0_85 = arith.constant 0 : index
    %104 = vector.load %arg5[%c0_84, %c0_85] : memref<32x32xf32, #tpu.memory_space<vmem>>, vector<32x32xf32>
    %cst_86 = arith.constant dense<0.000000e+00> : vector<32x256xf32>
    %105 = tpu.matmul %104, %103, %cst_86 {dimension_numbers = #tpu.dot_dimension_numbers<[1], [0], [0], [1], [0, 0, 1, 1], [], []>} : vector<32x32xf32>, vector<32x256xf32>, vector<32x256xf32> -> vector<32x256xf32>
    %106 = arith.addf %105, %5 : vector<32x256xf32>
    %107 = math.tanh %106 : vector<32x256xf32>
    %c0_87 = arith.constant 0 : index
    %c0_88 = arith.constant 0 : index
    %108 = vector.load %arg7[%c0_87, %c0_88] : memref<32x32xf32, #tpu.memory_space<vmem>>, vector<32x32xf32>
    %cst_89 = arith.constant dense<0.000000e+00> : vector<32x256xf32>
    %109 = tpu.matmul %108, %107, %cst_89 {dimension_numbers = #tpu.dot_dimension_numbers<[1], [0], [0], [1], [0, 0, 1, 1], [], []>} : vector<32x32xf32>, vector<32x256xf32>, vector<32x256xf32> -> vector<32x256xf32>
    %110 = arith.addf %94, %109 : vector<32x256xf32>
    %111 = arith.addf %110, %8 : vector<32x256xf32>
    %c6 = arith.constant 6 : index
    %c0_90 = arith.constant 0 : index
    %c0_91 = arith.constant 0 : index
    %112 = vector.load %arg1[%c6, %c0_90, %c0_91] : memref<8x4x256xf32, #tpu.memory_space<vmem>>, vector<1x4x256xf32>
    %113 = vector.shape_cast %112 : vector<1x4x256xf32> to vector<4x256xf32>
    %c0_92 = arith.constant 0 : index
    %c0_93 = arith.constant 0 : index
    %114 = vector.load %arg2[%c0_92, %c0_93] : memref<32x32xf32, #tpu.memory_space<vmem>>, vector<32x32xf32>
    %cst_94 = arith.constant dense<0.000000e+00> : vector<32x256xf32>
    %115 = tpu.matmul %114, %111, %cst_94 {dimension_numbers = #tpu.dot_dimension_numbers<[1], [0], [0], [1], [0, 0, 1, 1], [], []>} : vector<32x32xf32>, vector<32x256xf32>, vector<32x256xf32> -> vector<32x256xf32>
    %c0_95 = arith.constant 0 : index
    %c0_96 = arith.constant 0 : index
    %116 = vector.load %arg3[%c0_95, %c0_96] : memref<32x4xf32, #tpu.memory_space<vmem>>, vector<32x4xf32>
    %cst_97 = arith.constant dense<0.000000e+00> : vector<32x256xf32>
    %117 = tpu.matmul %116, %113, %cst_97 {dimension_numbers = #tpu.dot_dimension_numbers<[1], [0], [0], [1], [0, 0, 1, 1], [], []>} : vector<32x4xf32>, vector<4x256xf32>, vector<32x256xf32> -> vector<32x256xf32>
    %118 = arith.addf %115, %117 : vector<32x256xf32>
    %119 = arith.addf %118, %2 : vector<32x256xf32>
    %120 = math.tanh %119 : vector<32x256xf32>
    %c0_98 = arith.constant 0 : index
    %c0_99 = arith.constant 0 : index
    %121 = vector.load %arg5[%c0_98, %c0_99] : memref<32x32xf32, #tpu.memory_space<vmem>>, vector<32x32xf32>
    %cst_100 = arith.constant dense<0.000000e+00> : vector<32x256xf32>
    %122 = tpu.matmul %121, %120, %cst_100 {dimension_numbers = #tpu.dot_dimension_numbers<[1], [0], [0], [1], [0, 0, 1, 1], [], []>} : vector<32x32xf32>, vector<32x256xf32>, vector<32x256xf32> -> vector<32x256xf32>
    %123 = arith.addf %122, %5 : vector<32x256xf32>
    %124 = math.tanh %123 : vector<32x256xf32>
    %c0_101 = arith.constant 0 : index
    %c0_102 = arith.constant 0 : index
    %125 = vector.load %arg7[%c0_101, %c0_102] : memref<32x32xf32, #tpu.memory_space<vmem>>, vector<32x32xf32>
    %cst_103 = arith.constant dense<0.000000e+00> : vector<32x256xf32>
    %126 = tpu.matmul %125, %124, %cst_103 {dimension_numbers = #tpu.dot_dimension_numbers<[1], [0], [0], [1], [0, 0, 1, 1], [], []>} : vector<32x32xf32>, vector<32x256xf32>, vector<32x256xf32> -> vector<32x256xf32>
    %127 = arith.addf %111, %126 : vector<32x256xf32>
    %128 = arith.addf %127, %8 : vector<32x256xf32>
    %c7 = arith.constant 7 : index
    %c0_104 = arith.constant 0 : index
    %c0_105 = arith.constant 0 : index
    %129 = vector.load %arg1[%c7, %c0_104, %c0_105] : memref<8x4x256xf32, #tpu.memory_space<vmem>>, vector<1x4x256xf32>
    %130 = vector.shape_cast %129 : vector<1x4x256xf32> to vector<4x256xf32>
    %c0_106 = arith.constant 0 : index
    %c0_107 = arith.constant 0 : index
    %131 = vector.load %arg2[%c0_106, %c0_107] : memref<32x32xf32, #tpu.memory_space<vmem>>, vector<32x32xf32>
    %cst_108 = arith.constant dense<0.000000e+00> : vector<32x256xf32>
    %132 = tpu.matmul %131, %128, %cst_108 {dimension_numbers = #tpu.dot_dimension_numbers<[1], [0], [0], [1], [0, 0, 1, 1], [], []>} : vector<32x32xf32>, vector<32x256xf32>, vector<32x256xf32> -> vector<32x256xf32>
    %c0_109 = arith.constant 0 : index
    %c0_110 = arith.constant 0 : index
    %133 = vector.load %arg3[%c0_109, %c0_110] : memref<32x4xf32, #tpu.memory_space<vmem>>, vector<32x4xf32>
    %cst_111 = arith.constant dense<0.000000e+00> : vector<32x256xf32>
    %134 = tpu.matmul %133, %130, %cst_111 {dimension_numbers = #tpu.dot_dimension_numbers<[1], [0], [0], [1], [0, 0, 1, 1], [], []>} : vector<32x4xf32>, vector<4x256xf32>, vector<32x256xf32> -> vector<32x256xf32>
    %135 = arith.addf %132, %134 : vector<32x256xf32>
    %136 = arith.addf %135, %2 : vector<32x256xf32>
    %137 = math.tanh %136 : vector<32x256xf32>
    %c0_112 = arith.constant 0 : index
    %c0_113 = arith.constant 0 : index
    %138 = vector.load %arg5[%c0_112, %c0_113] : memref<32x32xf32, #tpu.memory_space<vmem>>, vector<32x32xf32>
    %cst_114 = arith.constant dense<0.000000e+00> : vector<32x256xf32>
    %139 = tpu.matmul %138, %137, %cst_114 {dimension_numbers = #tpu.dot_dimension_numbers<[1], [0], [0], [1], [0, 0, 1, 1], [], []>} : vector<32x32xf32>, vector<32x256xf32>, vector<32x256xf32> -> vector<32x256xf32>
    %140 = arith.addf %139, %5 : vector<32x256xf32>
    %141 = math.tanh %140 : vector<32x256xf32>
    %c0_115 = arith.constant 0 : index
    %c0_116 = arith.constant 0 : index
    %142 = vector.load %arg7[%c0_115, %c0_116] : memref<32x32xf32, #tpu.memory_space<vmem>>, vector<32x32xf32>
    %cst_117 = arith.constant dense<0.000000e+00> : vector<32x256xf32>
    %143 = tpu.matmul %142, %141, %cst_117 {dimension_numbers = #tpu.dot_dimension_numbers<[1], [0], [0], [1], [0, 0, 1, 1], [], []>} : vector<32x32xf32>, vector<32x256xf32>, vector<32x256xf32> -> vector<32x256xf32>
    %144 = arith.addf %128, %143 : vector<32x256xf32>
    %145 = arith.addf %144, %8 : vector<32x256xf32>
    %c0_118 = arith.constant 0 : index
    %c0_119 = arith.constant 0 : index
    %146 = vector.load %arg9[%c0_118, %c0_119] : memref<16x32xf32, #tpu.memory_space<vmem>>, vector<16x32xf32>
    %cst_120 = arith.constant dense<0.000000e+00> : vector<16x256xf32>
    %147 = tpu.matmul %146, %145, %cst_120 {dimension_numbers = #tpu.dot_dimension_numbers<[1], [0], [0], [1], [0, 0, 1, 1], [], []>} : vector<16x32xf32>, vector<32x256xf32>, vector<16x256xf32> -> vector<16x256xf32>
    %c0_121 = arith.constant 0 : index
    %c0_122 = arith.constant 0 : index
    %148 = vector.load %arg10[%c0_121, %c0_122] : memref<16x1xf32, #tpu.memory_space<vmem>>, vector<16x1xf32>
    %149 = vector.broadcast %148 : vector<16x1xf32> to vector<16x256xf32>
    %150 = arith.addf %147, %149 : vector<16x256xf32>
    %cst_123 = arith.constant 0.000000e+00 : f32
    %151 = vector.broadcast %cst_123 : f32 to vector<16x256xf32>
    %152 = arith.maximumf %150, %151 : vector<16x256xf32>
    %c0_124 = arith.constant 0 : index
    %c0_125 = arith.constant 0 : index
    %153 = vector.load %arg11[%c0_124, %c0_125] : memref<8x16xf32, #tpu.memory_space<vmem>>, vector<8x16xf32>
    %cst_126 = arith.constant dense<0.000000e+00> : vector<8x256xf32>
    %154 = tpu.matmul %153, %152, %cst_126 {dimension_numbers = #tpu.dot_dimension_numbers<[1], [0], [0], [1], [0, 0, 1, 1], [], []>} : vector<8x16xf32>, vector<16x256xf32>, vector<8x256xf32> -> vector<8x256xf32>
    %c0_127 = arith.constant 0 : index
    %c0_128 = arith.constant 0 : index
    %155 = vector.load %arg12[%c0_127, %c0_128] : memref<8x1xf32, #tpu.memory_space<vmem>>, vector<8x1xf32>
    %156 = vector.broadcast %155 : vector<8x1xf32> to vector<8x256xf32>
    %157 = arith.addf %154, %156 : vector<8x256xf32>
    %c0_129 = arith.constant 0 : index
    %c0_130 = arith.constant 0 : index
    %158 = vector.load %arg13[%c0_129, %c0_130] : memref<8x256xf32, #tpu.memory_space<vmem>>, vector<8x256xf32>
    tpu.vector_store %arg13[%c0_129, %c0_130], %157 {strides = array<i32>} : memref<8x256xf32, #tpu.memory_space<vmem>>, vector<8x256xf32>,
    return
  }
  func.func @transform_0(%arg0: i32) -> (i32, i32, i32) {
    %c0_i32 = arith.constant 0 : i32
    %c0_i32_0 = arith.constant 0 : i32
    %c0_i32_1 = arith.constant 0 : i32
    return %c0_i32, %c0_i32_0, %arg0 : i32, i32, i32
  }
  func.func @transform_1(%arg0: i32) -> (i32, i32) {
    %c0_i32 = arith.constant 0 : i32
    %c0_i32_0 = arith.constant 0 : i32
    %c0_i32_1 = arith.constant 0 : i32
    return %c0_i32, %c0_i32_0 : i32, i32
  }
  func.func @transform_2(%arg0: i32) -> (i32, i32) {
    %c0_i32 = arith.constant 0 : i32
    %c0_i32_0 = arith.constant 0 : i32
    %c0_i32_1 = arith.constant 0 : i32
    return %c0_i32, %c0_i32_0 : i32, i32
  }
  func.func @transform_3(%arg0: i32) -> (i32, i32) {
    %c0_i32 = arith.constant 0 : i32
    %c0_i32_0 = arith.constant 0 : i32
    %c0_i32_1 = arith.constant 0 : i32
    return %c0_i32, %c0_i32_0 : i32, i32
  }
  func.func @transform_4(%arg0: i32) -> (i32, i32) {
    %c0_i32 = arith.constant 0 : i32
    %c0_i32_0 = arith.constant 0 : i32
    %c0_i32_1 = arith.constant 0 : i32
    return %c0_i32, %c0_i32_0 : i32, i32
  }
  func.func @transform_5(%arg0: i32) -> (i32, i32) {
    %c0_i32 = arith.constant 0 : i32
    %c0_i32_0 = arith.constant 0 : i32
    %c0_i32_1 = arith.constant 0 : i32
    return %c0_i32, %c0_i32_0 : i32, i32
  }
  func.func @transform_6(%arg0: i32) -> (i32, i32) {
    %c0_i32 = arith.constant 0 : i32
    %c0_i32_0 = arith.constant 0 : i32
    %c0_i32_1 = arith.constant 0 : i32
    return %c0_i32, %c0_i32_0 : i32, i32
  }
  func.func @transform_7(%arg0: i32) -> (i32, i32) {
    %c0_i32 = arith.constant 0 : i32
    %c0_i32_0 = arith.constant 0 : i32
    %c0_i32_1 = arith.constant 0 : i32
    return %c0_i32, %c0_i32_0 : i32, i32
  }
  func.func @transform_8(%arg0: i32) -> (i32, i32) {
    %c0_i32 = arith.constant 0 : i32
    %c0_i32_0 = arith.constant 0 : i32
    %c0_i32_1 = arith.constant 0 : i32
    return %c0_i32, %c0_i32_0 : i32, i32
  }
  func.func @transform_9(%arg0: i32) -> (i32, i32) {
    %c0_i32 = arith.constant 0 : i32
    %c0_i32_0 = arith.constant 0 : i32
    %c0_i32_1 = arith.constant 0 : i32
    return %c0_i32, %c0_i32_0 : i32, i32
  }
  func.func @transform_10(%arg0: i32) -> (i32, i32) {
    %c0_i32 = arith.constant 0 : i32
    %c0_i32_0 = arith.constant 0 : i32
    %c0_i32_1 = arith.constant 0 : i32
    return %c0_i32, %c0_i32_0 : i32, i32
  }
  func.func @transform_11(%arg0: i32) -> (i32, i32) {
    %c0_i32 = arith.constant 0 : i32
    %c0_i32_0 = arith.constant 0 : i32
    %c0_i32_1 = arith.constant 0 : i32
    return %c0_i32, %c0_i32_0 : i32, i32
  }
  func.func @transform_12(%arg0: i32) -> (i32, i32) {
    %c0_i32 = arith.constant 0 : i32
    %c0_i32_0 = arith.constant 0 : i32
    return %c0_i32, %arg0 : i32, i32
  }
}

</mosaic_0001>

<bundles_post_ra>
// kernel: _lambda_.1
= control target key start
LH: loop header
LB: loop body
LE: loop exit
PB: predicated region body
PF: predicated region fallthrough
CT: control target
= control target key end

     0   :  { %17 = vsyncpa [#allocation3], 0  ;;  %s5153_s0 = inlined_call_operand.hbm [shape: f32[8,4,1024], index: 0, kind: input, shape index: {}]   ;;  %s5154_s1 = inlined_call_operand.vmem [shape: f32[32,32], index: 1, kind: input, shape index: {}]   ;;  %s5155_s2 = inlined_call_operand.vmem [shape: f32[32,4], index: 2, kind: input, shape index: {}]   ;;  %s5156_s3 = inlined_call_operand.vmem [shape: f32[32,1], index: 3, kind: input, shape index: {}]   ;;  %s5157_s4 = inlined_call_operand.vmem [shape: f32[32,32], index: 4, kind: input, shape index: {}]   ;;  %s5158_s5 = inlined_call_operand.vmem [shape: f32[32,1], index: 5, kind: input, shape index: {}]   ;;  %s5159_s6 = inlined_call_operand.vmem [shape: f32[32,32], index: 6, kind: input, shape index: {}]   ;;  %s5160_s7 = inlined_call_operand.vmem [shape: f32[32,1], index: 7, kind: input, shape index: {}]   ;;  %s5161_s8 = inlined_call_operand.vmem [shape: f32[16,32], index: 8, kind: input, shape index: {}]   ;;  %s5162_s9 = inlined_call_operand.vmem [shape: f32[16,1], index: 9, kind: input, shape index: {}]   ;;  %s5163_s10 = inlined_call_operand.vmem [shape: f32[8,16], index: 10, kind: input, shape index: {}]   ;;  %s5164_s11 = inlined_call_operand.vmem [shape: f32[8,1], index: 11, kind: input, shape index: {}]   ;;  %s5165_s12 = inlined_call_operand.hbm [shape: f32[8,1024], index: 12, kind: output, shape index: {}]  }
   0x1   :  { %19 = vsyncpa [#allocation3 + $0x1], 0 }
   0x2   :  { %20 = vsyncpa [#allocation4], 0 }
   0x3   :  { %22 = vsyncpa [#allocation4 + $0x1], 0  ;;  %s3826_s21 = smov 0   ;;  %s3828_s22 = smov 0  }
   0x4   :  { %s3830_s23 = smov 0   ;;  %s3832_s24 = smov 0  }
   0x5 LB: > { %5173 = sst [smem:[#allocation8_spill]] %s3742_s21  ;;  %s3847_s25 = sadd.s32 4294967295, %s3754_s24   ;;  %s3754_s24 = sphi %s3832_s24, %s5187_s24   ;;  %s3750_s23 = sphi %s3830_s23, %s5189_s23   ;;  %s3746_s22 = sphi %s3828_s22, %s5191_s22   ;;  %s3742_s21 = sphi %s3826_s21, %s5190_s21  }
   0x6   : > { %5174 = sst [smem:[#allocation9_spill]] %s3750_s23  ;;  %s3024_s26 = sadd.s32 4294967294, %s3754_s24  }
   0x7   : > { %s3851_s27 = sadd.s32 1, %s3754_s24   ;;  %s35_s28 = sadd.s32 1, %s3750_s23 }
   0x8   : > { %5175 = sst [smem:[#allocation10_spill]] %s3851_s27  ;;  %s32_s29 = ssub.s32 %s3754_s24, %s3851_s27 }
   0x9   : > { %p42_p0 = scmp.ne.s32.totalorder %s3750_s23, %s3746_s22  ;;  %p33_p1 = scmp.eq.s32.totalorder %s32_s29, 0 }
   0xa   : > { %p43_p2 = scmp.eq.s32.totalorder %s3754_s24, 0  ;;  %p48_p3 = scmp.ne.s32.totalorder %s3746_s22, %s3742_s21 }
   0xb   : > { %p49_p4 = scmp.eq.s32.totalorder %s3847_s25, 0  ;;  %p303_p7 = scmp.eq.s32.totalorder %s3847_s25, 3 }
   0xc   : > { %s3863_s30 = scalar_select %p33_p1, %s3750_s23, %s35_s28  }
   0xd   : > { %p3865_p5 = por %p43_p2, %p42_p0  ;;  %p3869_p6 = por %p49_p4, %p48_p3 }
   0xe   : > { %5176 = sst [smem:[#allocation11_spill]] %s3863_s30  ;;  %p309_p8 = scmp.eq.s32.totalorder %s3024_s26, 3 }
   0xf   : > { %p3337_p9 = scmp.lt.s32.totalorder %s3754_s24, 4  ;;  %p3875_p10 = por %p303_p7, %p42_p0 }
  0x10   : > { %p3879_p11 = por %p309_p8, %p48_p3  ;;  %s362_s17 = sand.u32 1, %s3750_s23  }
  0x11   : > { %s5179_s15 = scalar_select %p3875_p10, 1, 0 }
  0x12   : > { %s5181_s16 = scalar_select %p3879_p11, 1, 0 }
  0x13   : > { %5180 = sst [smem:[#allocation12_spill]] %s5179_s15  ;;  %s3323_s18 = sshll.u32 %s3754_s24, 3 }
  0x14   : > { %5182 = sst [smem:[#allocation13_spill]] %s5181_s16  ;;  %s3027_s19 = sshll.u32 %s362_s17, 6 }
  0x15   : > { %s371_s29 = scalar_lea.hbm %s5153_s0, %s3323_s18  ;;  %s366_s27 = scalar_lea.vmem [#allocation2], %s3027_s19 }
  0x16   : > { %s372_s30 = sshll.u32 %s371_s29, 4  ;;  %s374_s21 = sshll.u32 %s366_s27, 4  ;;  %s373_s30 = int_to_ptr.hbm [resolvable:$true] %s372_s30  ;;  %s375_s21 = int_to_ptr.vmem [resolvable:$true] %s374_s21 }
  0x17   : > { %p3890_p12 = pnand %p3337_p9, %p3865_p5  ;;  %p3030_p13 = scmp.ge.s32.totalorder %s3754_s24, 1 }
  0x18   : > { %s363_s16 = scalar_lea.sflag [#allocation3], %s362_s17  ;;  %s3658_s23 = sshra.s32 %s373_s30, 4  ;;  %s3659_s23 = int_to_ptr.hbm [resolvable:$true] %s3658_s23 }
  0x19   : > { %s3660_s15 = scalar_lea.hbm %s3659_s23, 64  ;;  %p3662_p1 = pneg %p3890_p12 }
  0x1a   : > { %p3661_p0 = scmp.ne.s32.totalorder %s3659_s23, %s3660_s15  ;;  %s3665_s19 = scalar_lea.hbm %s5153_s0, 256 }
  0x1b   : > { %p3666_p4 = scmp.lt.s32.totalorder %s3659_s23, %s5153_s0  ;;  %p3667_p5 = scmp.lt.s32.totalorder %s3665_s19, %s3660_s15 }
  0x1c   : > { %p3663_p2 = pnand %p3662_p1, %p3661_p0 }
  0x1d   : > { %p3668_p7 = por %p3667_p5, %p3666_p4 }
  0x1e   : > { %p3664_p3 = pneg %p3663_p2 }
  0x20   : > { %p3669_p8 = pnand %p3668_p7, %p3664_p3 }
  0x22   : > { %3672 = shalt.err (!%p3669_p8)
}
  0x23   : > { %s3756_s17 = smov 512   ;;  %s3757_s28 = smov 128  }
  0x24   : > { %s3758_s29 = smov 8   ;;  %p382_p9 = scmp.lt.s32.totalorder %s3754_s24, 5 }
  0x25   : > { %3332 = dma.hbm_to_vmem [thread:$0]  (!%p3890_p12), %s373_s30, 1024, %s375_s21, %s363_s16, %s3756_s17, %s3757_s28, %s3758_s29  }
  0x26   : > { %p383_p0 = pnand %p3030_p13, %p382_p9 }
  0x27   : > { %s3909_s18 = sand.u32 (!%p383_p0), 1, %s3746_s22  }
  0x28   : > { %386 = sbr.rel (%p383_p0) target bundleno = 4383 (0x111f), region = 68  ;;  %s3031_s23 = sshll.u32 (!%p383_p0), %s3909_s18, 6 }
  0x29   : > { %s389_s15 = scalar_lea.sflag (!%p383_p0), [#allocation3], %s3909_s18  ;;  %s3913_s27 = scalar_lea.vmem (!%p383_p0), [#allocation2], %s3031_s23 }
  0x2d   : > { %3733 = dma.done.wait (%p3869_p6), %s389_s15, 1024  }
  0x2e   : > { %3735 = vsyncadd (%p3869_p6), %s389_s15, 4294966272  ;;  %v3759_v0 = vmov 0.0   ;;  %v3760_v1 = vmov 0   ;;  %vm597_vm0 = vcmask 261120   ;;  %v3922_v2 = vld [vmem:[%s5154_s1] sm:$0xff]  ;;  %v508_v3 = vld [vmem:[%s3913_s27] sm:$0xff] }
  0x2f   : > { %625 = vmatpush.msra.mxu2 %v3759_v0  ;;  %654 = vmatpush.msra.mxu3 %v3759_v0  ;;  %518 = vst [vmem:[#allocation1] ss:$2 sm:$0xff] %v508_v3  ;;  %v439_v4 = vld [vmem:[%s5156_s3 + $0x18] sm:$0xff]  ;;  %v437_v5 = vld [vmem:[%s5156_s3 + $0x8] sm:$0xff]  ;;  %vm534_vm1 = vcmask 1043456   ;;  %v3067_v6 = vld [vmem:[%s3913_s27 + $0x8] sm:$0xff] }
  0x30   : > { %3376 = vset.pattern.permute.xlu0 %v3760_v1  ;;  %3377 = vset.pattern.permute.xlu1 %v3760_v1  ;;  %v3939_v7 = vld [vmem:[%s5155_s2] sm:$0xff]  ;;  %vm521_vm2 = vcmask 31744   ;;  %v3944_v8 = vld [vmem:[%s5154_s1 + $0x8] sm:$0xff]  ;;  %v438_v11 = vld [vmem:[%s5156_s3 + $0x10] sm:$0xff]  ;;  %vm2891_vm3 = vcmask 130048   ;;  %s3032_s17 = sshll.u32 %s3909_s18, 4 }
  0x31   : > { %3378 = vset.pattern.permute.xlu2 %v3760_v1  ;;  %3043 = vmatmul.msk.f32.vlgmr.msra.gmra.mxu2 %vm597_vm0, %v3922_v2  ;;  %v436_v12 = vld [vmem:[%s5156_s3] sm:$0xff]  ;;  %v3965_v13 = vld [vmem:[%s5155_s2 + $0x8] sm:$0xff]  ;;  %v3970_v14 = vld [vmem:[%s5154_s1 + $0x10] sm:$0xff]  ;;  %s3324_s28 = sshll.u32 %s3847_s25, 4  ;;  %s433_s21 = scalar_lea.vmem [#allocation5], %s3032_s17 }
  0x32   : > { %3047 = vmatmul.msk.f32.vlgmr.msra.gmra.mxu3 %vm597_vm0, %v3922_v2  ;;  %457 = vperm.xlu0 %3376, %v439_v4   ;;  %v461_v15 = vld [vmem:[%s5158_s5 + $0x8] sm:$0xff]  ;;  %v460_v16 = vld [vmem:[%s5158_s5] sm:$0xff]  ;;  %v3989_v17 = vld [vmem:[%s5155_s2 + $0x10] sm:$0xff]  ;;  %s2949_s15 = scalar_lea.hbm %s5165_s12, %s3324_s28  ;;  %s2951_s30 = sshll.u32 %s433_s21, 4  ;;  %s2952_s30 = int_to_ptr.vmem [resolvable:$true] %s2951_s30 }
  0x33   : > { %447 = vperm.xlu1 %3377, %v437_v5   ;;  %v3994_v18 = vld [vmem:[%s5154_s1 + $0x18] sm:$0xff]  ;;  %v486_v19 = vld [vmem:[%s5160_s7 + $0x10] sm:$0xff]  ;;  %v485_v20 = vld [vmem:[%s5160_s7 + $0x8] sm:$0xff]  ;;  %s2953_s16 = sshll.u32 %s2949_s15, 4  ;;  %s2938_s26 = scalar_lea.sflag [#allocation4], %s3909_s18  ;;  %s2954_s16 = int_to_ptr.hbm [resolvable:$true] %s2953_s16 }
  0x34   : > { %v4013_v21 = vld [vmem:[%s5155_s2 + $0x18] sm:$0xff]  ;;  %v2817_v22 = vld [vmem:[%s5162_s9 + $0x8] sm:$0xff]  ;;  %v2816_v23 = vld [vmem:[%s5162_s9] sm:$0xff]  ;;  %s3708_s20 = scalar_lea.hbm %s5165_s12, 64 }
  0x35   : > { %v463_v55 = vld [vmem:[%s5158_s5 + $0x18] sm:$0xff]  ;;  %v462_v63 = vld [vmem:[%s5158_s5 + $0x10] sm:$0xff]  ;;  %v4050_v5 = vld [vmem:[%s5157_s4] sm:$0xff] }
  0x36   : > { %v519_v9 = vld.sshfl [vmem:[#allocation1] sm:$0xff pattern:$0x75316420]  ;;  %v520_v10 = vld.sshfl [vmem:[#allocation1 + $0x8] sm:$0xff pattern:$0x75316420]  ;;  %481 = vperm.xlu2 %3378, %v463_v55  }
  0x37   : > { %3033 = vmatpush.msk.msra.mxu0 %vm534_vm1, %v519_v9  ;;  %3038 = vmatpush.msk.msra.mxu1 %vm534_vm1, %v520_v10  ;;  %843 = vst [vmem:[#allocation1] ss:$2 sm:$0xff] %v3067_v6  ;;  %v487_v10 = vld [vmem:[%s5160_s7 + $0x18] sm:$0xff] }
  0x38   : > { %3034 = vmatmul.msk.f32.vlgmr.msra.gmra.mxu0 %vm521_vm2, %v3939_v7  ;;  %3039 = vmatmul.msk.f32.vlgmr.msra.gmra.mxu1 %vm521_vm2, %v3939_v7  ;;  %v4138_v55 = vld [vmem:[%s5159_s6 + $0x18] sm:$0xff] }
  0x39   : > { %3044 = vmatmul.msk.f32.gmra.mxu2 %vm597_vm0, %v3944_v8 }
  0x3a   : > { %3048 = vmatmul.msk.f32.gmra.mxu3 %vm597_vm0, %v3944_v8  ;;  %452 = vperm.xlu0 %3376, %v438_v11   ;;  %v4062_v11 = vld [vmem:[%s5157_s4 + $0x8] sm:$0xff] }
  0x3b   : > { %442 = vperm.xlu1 %3377, %v436_v12   ;;  %v484_v12 = vld [vmem:[%s5160_s7] sm:$0xff] }
  0x3e   : > { %476 = vperm.xlu2 %3378, %v462_v63  }
  0x40   : > { %3035 = vmatmul.msk.f32.gmra.mxu0 %vm521_vm2, %v3965_v13  ;;  %3040 = vmatmul.msk.f32.gmra.mxu1 %vm521_vm2, %v3965_v13 }
  0x41   : > { %3045 = vmatmul.msk.f32.gmra.mxu2 %vm597_vm0, %v3970_v14 }
  0x42   : > { %3049 = vmatmul.msk.f32.gmra.mxu3 %vm597_vm0, %v3970_v14  ;;  %471 = vperm.xlu0 %3376, %v461_v15   ;;  %v4074_v15 = vld [vmem:[%s5157_s4 + $0x10] sm:$0xff] }
  0x43   : > { %466 = vperm.xlu1 %3377, %v460_v16   ;;  %v2885_v16 = vld [vmem:[%s5164_s11] sm:$0xff] }
  0x46   : > { %505 = vperm.xlu2 %3378, %v487_v10  }
  0x48   : > { %3036 = vmatmul.msk.f32.gmra.mxu0 %vm521_vm2, %v3989_v17  ;;  %3041 = vmatmul.msk.f32.gmra.mxu1 %vm521_vm2, %v3989_v17 }
  0x49   : > { %3046 = vmatmul.msk.f32.gmra.mxu2 %vm597_vm0, %v3994_v18 }
  0x4a   : > { %3050 = vmatmul.msk.f32.gmra.mxu3 %vm597_vm0, %v3994_v18  ;;  %500 = vperm.xlu0 %3376, %v486_v19   ;;  %v4086_v19 = vld [vmem:[%s5157_s4 + $0x18] sm:$0xff] }
  0x4b   : > { %495 = vperm.xlu1 %3377, %v485_v20  }
  0x4e   : > { %490 = vperm.xlu2 %3378, %v484_v12  }
  0x50   : > { %3037 = vmatmul.msk.f32.gmra.mxu0 %vm521_vm2, %v4013_v21  ;;  %3042 = vmatmul.msk.f32.gmra.mxu1 %vm521_vm2, %v4013_v21 }
  0x52   : > { %2825 = vperm.xlu0 %3376, %v2817_v22  }
  0x53   : > { %2820 = vperm.xlu1 %3377, %v2816_v23  }
  0x56   : > { %2888 = vperm.xlu2 %3378, %v2885_v16  }
  0xa4   : > { %v4025_v32 = vpop.permute.xlu0 %457 }
  0xa5   : > { %v4027_v37 = vpop.permute.xlu1 %447 }
  0xac   : > { %v4029_v47 = vpop.permute.xlu0 %452 }
  0xad   : > { %v4039_v57 = vpop.permute.xlu1 %442 }
  0xb4   : > { %v627_v24 = vpop.f32.mrf.mxu2 }
  0xb5   : > { %v656_v25 = vpop.f32.mrf.mxu3  ;;  %v556_v26 = vpop.f32.mrf.mxu0 }
  0xb6   : > { %v585_v27 = vpop.f32.mrf.mxu1  ;;  %v628_v49 = vadd.f32 %v627_v24, %v556_v26 }
  0xb7   : > { %v657_v53 = vadd.f32 %v656_v25, %v585_v27  ;;  %v4092_v25 = vpop.permute.xlu2 %481 }
  0xb8   : > { %v668_v59 = vadd.f32 %v628_v49, %v4039_v57 }
  0xb9   : > { %v669_v60 = vadd.f32 %v657_v53, %v4039_v57  ;;  %v4120_v53 = vld [vmem:[%s5159_s6 + $0x8] sm:$0xff] }
  0xbc   : > { %v630_v28 = vpop.f32.mrf.mxu2 }
  0xbd   : > { %v659_v29 = vpop.f32.mrf.mxu3  ;;  %v559_v30 = vpop.f32.mrf.mxu0 }
  0xbe   : > { %v588_v31 = vpop.f32.mrf.mxu1  ;;  %v631_v44 = vadd.f32 %v630_v28, %v559_v30 }
  0xbf   : > { %v660_v48 = vadd.f32 %v659_v29, %v588_v31  ;;  %v4094_v28 = vpop.permute.xlu2 %476 }
  0xc0   : > { %v670_v56 = vadd.f32 %v631_v44, %v4027_v37 }
  0xc1   : > { %v671_v58 = vadd.f32 %v660_v48, %v4027_v37 }
  0xc4   : > { %v633_v33 = vpop.f32.mrf.mxu2 }
  0xc5   : > { %v662_v34 = vpop.f32.mrf.mxu3  ;;  %v562_v35 = vpop.f32.mrf.mxu0 }
  0xc6   : > { %v591_v36 = vpop.f32.mrf.mxu1  ;;  %v634_v38 = vadd.f32 %v633_v33, %v562_v35 }
  0xc7   : > { %v663_v41 = vadd.f32 %v662_v34, %v591_v36  ;;  %v4098_v34 = vpop.permute.xlu0 %471 }
  0xc8   : > { %v672_v50 = vadd.f32 %v634_v38, %v4029_v47 }
  0xc9   : > { %v673_v54 = vadd.f32 %v663_v41, %v4029_v47 }
  0xcc   : > { %v636_v39 = vpop.f32.mrf.mxu2 }
  0xcd   : > { %v665_v40 = vpop.f32.mrf.mxu3  ;;  %v565_v42 = vpop.f32.mrf.mxu0 }
  0xce   : > { %v594_v43 = vpop.f32.mrf.mxu1  ;;  %v637_v45 = vadd.f32 %v636_v39, %v565_v42  ;;  %v4103_v39 = vpop.permute.xlu1 %466 }
  0xcf   : > { %v666_v46 = vadd.f32 %v665_v40, %v594_v43  ;;  %v4164_v10 = vpop.permute.xlu0 %500 }
  0xd0   : > { %v674_v51 = vadd.f32 %v637_v45, %v4025_v32 }
  0xd1   : > { %v675_v52 = vadd.f32 %v666_v46, %v4025_v32 }
  0xd2   : > { %3379 = vtanh.f32 %v674_v51 }
  0xd3   : > { %3381 = vtanh.f32 %v675_v52 }
  0xd4   : > { %3383 = vtanh.f32 %v672_v50  ;;  %v4111_v50 = vld [vmem:[%s5159_s6] sm:$0xff] }
  0xd5   : > { %3385 = vtanh.f32 %v673_v54  ;;  %v4129_v54 = vld [vmem:[%s5159_s6 + $0x10] sm:$0xff] }
  0xd6   : > { %3387 = vtanh.f32 %v670_v56 }
  0xd7   : > { %3389 = vtanh.f32 %v671_v58 }
  0xd8   : > { %v3380_v61 = vpop.eup %3379  ;;  %3391 = vtanh.f32 %v668_v59  ;;  %v844_v59 = vld.sshfl [vmem:[#allocation1] sm:$0xff pattern:$0x75316420] }
  0xd9   : > { %v3382_v62 = vpop.eup %3381  ;;  %712 = vmatpush.msrb.mxu0 %v3380_v61  ;;  %3393 = vtanh.f32 %v669_v60  ;;  %v845_v60 = vld.sshfl [vmem:[#allocation1 + $0x8] sm:$0xff pattern:$0x75316420]  ;;  %v3102_v61 = vld [vmem:[%s3913_s27 + $0x10] sm:$0xff] }
  0xda   : > { %v3384_v0 = vpop.eup %3383  ;;  %741 = vmatpush.msrb.mxu1 %v3382_v62  ;;  %1125 = vst [vmem:[#allocation1] ss:$2 sm:$0xff] %v3102_v61 }
  0xdb   : > { %v3386_v1 = vpop.eup %3385  ;;  %713 = vmatpush.msrb.mxu0 %v3384_v0 }
  0xdc   : > { %v3388_v3 = vpop.eup %3387  ;;  %742 = vmatpush.msrb.mxu1 %v3386_v1 }
  0xdd   : > { %v3390_v4 = vpop.eup %3389  ;;  %714 = vmatpush.msrb.mxu0 %v3388_v3  ;;  %v4155_v3 = vpop.permute.xlu2 %505 }
  0xde   : > { %v3392_v6 = vpop.eup %3391  ;;  %743 = vmatpush.msrb.mxu1 %v3390_v4 }
  0xdf   : > { %v3394_v9 = vpop.eup %3393  ;;  %715 = vmatpush.msrb.mxu0 %v3392_v6 }
  0xe0   : > { %744 = vmatpush.msrb.mxu1 %v3394_v9  ;;  %3051 = vmatmul.msk.f32.vlgmr.msrb.gmra.mxu0 %vm597_vm0, %v4050_v5 }
  0xe1   : > { %3055 = vmatmul.msk.f32.vlgmr.msrb.gmra.mxu1 %vm597_vm0, %v4050_v5  ;;  %3068 = vmatpush.msk.msra.mxu0 %vm534_vm1, %v844_v59 }
  0xe2   : > { %3073 = vmatpush.msk.msra.mxu1 %vm534_vm1, %v845_v60 }
  0xe8   : > { %3052 = vmatmul.msk.f32.gmra.mxu0 %vm597_vm0, %v4062_v11 }
  0xe9   : > { %3056 = vmatmul.msk.f32.gmra.mxu1 %vm597_vm0, %v4062_v11 }
  0xf0   : > { %3053 = vmatmul.msk.f32.gmra.mxu0 %vm597_vm0, %v4074_v15 }
  0xf1   : > { %3057 = vmatmul.msk.f32.gmra.mxu1 %vm597_vm0, %v4074_v15 }
  0xf8   : > { %3054 = vmatmul.msk.f32.gmra.mxu0 %vm597_vm0, %v4086_v19 }
  0xf9   : > { %3058 = vmatmul.msk.f32.gmra.mxu1 %vm597_vm0, %v4086_v19 }
 0x100   : > { %3069 = vmatmul.msk.f32.vlgmr.msra.gmra.mxu0 %vm521_vm2, %v3939_v7 }
 0x101   : > { %3074 = vmatmul.msk.f32.vlgmr.msra.gmra.mxu1 %vm521_vm2, %v3939_v7 }
 0x108   : > { %3070 = vmatmul.msk.f32.gmra.mxu0 %vm521_vm2, %v3965_v13 }
 0x109   : > { %3075 = vmatmul.msk.f32.gmra.mxu1 %vm521_vm2, %v3965_v13 }
 0x110   : > { %3071 = vmatmul.msk.f32.gmra.mxu0 %vm521_vm2, %v3989_v17 }
 0x111   : > { %3076 = vmatmul.msk.f32.gmra.mxu1 %vm521_vm2, %v3989_v17 }
 0x118   : > { %3072 = vmatmul.msk.f32.gmra.mxu0 %vm521_vm2, %v4013_v21 }
 0x119   : > { %3077 = vmatmul.msk.f32.gmra.mxu1 %vm521_vm2, %v4013_v21 }
 0x15d   : > { %v717_v20 = vpop.f32.mrf.mxu0 }
 0x15e   : > { %v746_v22 = vpop.f32.mrf.mxu1  ;;  %v718_v41 = vadd.f32 %v717_v20, %v4103_v39  ;;  %v4173_v20 = vpop.permute.xlu1 %495 }
 0x15f   : > { %v747_v42 = vadd.f32 %v746_v22, %v4103_v39 }
 0x165   : > { %v720_v23 = vpop.f32.mrf.mxu0 }
 0x166   : > { %v749_v24 = vpop.f32.mrf.mxu1  ;;  %v721_v38 = vadd.f32 %v720_v23, %v4098_v34 }
 0x167   : > { %v750_v40 = vadd.f32 %v749_v24, %v4098_v34  ;;  %v4185_v24 = vpop.permute.xlu2 %490 }
 0x16d   : > { %v723_v26 = vpop.f32.mrf.mxu0 }
 0x16e   : > { %v752_v27 = vpop.f32.mrf.mxu1  ;;  %v724_v30 = vadd.f32 %v723_v26, %v4094_v28 }
 0x16f   : > { %v753_v35 = vadd.f32 %v752_v27, %v4094_v28 }
 0x175   : > { %v726_v29 = vpop.f32.mrf.mxu0 }
 0x176   : > { %v727_v31 = vadd.f32 %v726_v29, %v4092_v25  ;;  %v755_v33 = vpop.f32.mrf.mxu1 }
 0x177   : > { %v756_v36 = vadd.f32 %v755_v33, %v4092_v25 }
 0x178   : > { %3395 = vtanh.f32 %v727_v31 }
 0x179   : > { %3397 = vtanh.f32 %v756_v36 }
 0x17a   : > { %3399 = vtanh.f32 %v724_v30 }
 0x17b   : > { %3401 = vtanh.f32 %v753_v35 }
 0x17c   : > { %3403 = vtanh.f32 %v721_v38 }
 0x17d   : > { %3405 = vtanh.f32 %v750_v40  ;;  %v867_v30 = vpop.f32.mrf.mxu0 }
 0x17e   : > { %v3396_v43 = vpop.eup %3395  ;;  %3407 = vtanh.f32 %v718_v41  ;;  %v896_v31 = vpop.f32.mrf.mxu1 }
 0x17f   : > { %v3398_v44 = vpop.eup %3397  ;;  %3409 = vtanh.f32 %v747_v42  ;;  %794 = vmatpush.msrb.mxu2 %v3396_v43 }
 0x180   : > { %v3400_v45 = vpop.eup %3399  ;;  %823 = vmatpush.msrb.mxu3 %v3398_v44 }
 0x181   : > { %v3402_v46 = vpop.eup %3401  ;;  %795 = vmatpush.msrb.mxu2 %v3400_v45 }
 0x182   : > { %v3404_v48 = vpop.eup %3403  ;;  %824 = vmatpush.msrb.mxu3 %v3402_v46 }
 0x183   : > { %v3406_v49 = vpop.eup %3405  ;;  %796 = vmatpush.msrb.mxu2 %v3404_v48 }
 0x184   : > { %v3408_v51 = vpop.eup %3407  ;;  %825 = vmatpush.msrb.mxu3 %v3406_v49 }
 0x185   : > { %v3410_v52 = vpop.eup %3409  ;;  %797 = vmatpush.msrb.mxu2 %v3408_v51  ;;  %v870_v36 = vpop.f32.mrf.mxu0 }
 0x186   : > { %826 = vmatpush.msrb.mxu3 %v3410_v52  ;;  %3059 = vmatmul.msk.f32.vlgmr.msrb.gmra.mxu2 %vm597_vm0, %v4111_v50  ;;  %v899_v38 = vpop.f32.mrf.mxu1 }
 0x187   : > { %3063 = vmatmul.msk.f32.vlgmr.msrb.gmra.mxu3 %vm597_vm0, %v4111_v50 }
 0x18d   : > { %v873_v42 = vpop.f32.mrf.mxu0 }
 0x18e   : > { %3060 = vmatmul.msk.f32.gmra.mxu2 %vm597_vm0, %v4120_v53  ;;  %v902_v43 = vpop.f32.mrf.mxu1 }
 0x18f   : > { %3064 = vmatmul.msk.f32.gmra.mxu3 %vm597_vm0, %v4120_v53 }
 0x195   : > { %v876_v46 = vpop.f32.mrf.mxu0 }
 0x196   : > { %3061 = vmatmul.msk.f32.gmra.mxu2 %vm597_vm0, %v4129_v54  ;;  %v905_v49 = vpop.f32.mrf.mxu1 }
 0x197   : > { %3065 = vmatmul.msk.f32.gmra.mxu3 %vm597_vm0, %v4129_v54 }
 0x19e   : > { %3062 = vmatmul.msk.f32.gmra.mxu2 %vm597_vm0, %v4138_v55 }
 0x19f   : > { %3066 = vmatmul.msk.f32.gmra.mxu3 %vm597_vm0, %v4138_v55 }
 0x209   : > { %v799_v56 = vpop.f32.mrf.mxu2 }
 0x20a   : > { %v828_v58 = vpop.f32.mrf.mxu3  ;;  %v4194_v27 = vadd.f32 %v799_v56, %v4185_v24 }
 0x20b   : > { %v4198_v29 = vadd.f32 %v828_v58, %v4185_v24 }
 0x211   : > { %v802_v62 = vpop.f32.mrf.mxu2 }
 0x212   : > { %v831_v63 = vpop.f32.mrf.mxu3  ;;  %v4180_v23 = vadd.f32 %v802_v62, %v4173_v20 }
 0x213   : > { %v4188_v26 = vadd.f32 %v831_v63, %v4173_v20 }
 0x219   : > { %v805_v0 = vpop.f32.mrf.mxu2 }
 0x21a   : > { %v834_v1 = vpop.f32.mrf.mxu3  ;;  %v4170_v16 = vadd.f32 %v805_v0, %v4164_v10 }
 0x21b   : > { %v4176_v22 = vadd.f32 %v834_v1, %v4164_v10 }
 0x221   : > { %v808_v4 = vpop.f32.mrf.mxu2 }
 0x222   : > { %v4162_v6 = vadd.f32 %v808_v4, %v4155_v3  ;;  %v837_v9 = vpop.f32.mrf.mxu3 }
 0x223   : > { %v4167_v12 = vadd.f32 %v837_v9, %v4155_v3 }
 0x224   : > { %920 = vmatpush.msra.mxu2 %v4162_v6 }
 0x225   : > { %949 = vmatpush.msra.mxu3 %v4167_v12 }
 0x226   : > { %921 = vmatpush.msra.mxu2 %v4170_v16 }
 0x227   : > { %950 = vmatpush.msra.mxu3 %v4176_v22 }
 0x228   : > { %922 = vmatpush.msra.mxu2 %v4180_v23 }
 0x229   : > { %951 = vmatpush.msra.mxu3 %v4188_v26 }
 0x22a   : > { %923 = vmatpush.msra.mxu2 %v4194_v27 }
 0x22b   : > { %952 = vmatpush.msra.mxu3 %v4198_v29  ;;  %3078 = vmatmul.msk.f32.vlgmr.msra.gmra.mxu2 %vm597_vm0, %v3922_v2 }
 0x22c   : > { %3082 = vmatmul.msk.f32.vlgmr.msra.gmra.mxu3 %vm597_vm0, %v3922_v2 }
 0x233   : > { %3079 = vmatmul.msk.f32.gmra.mxu2 %vm597_vm0, %v3944_v8 }
 0x234   : > { %3083 = vmatmul.msk.f32.gmra.mxu3 %vm597_vm0, %v3944_v8 }
 0x23b   : > { %3080 = vmatmul.msk.f32.gmra.mxu2 %vm597_vm0, %v3970_v14 }
 0x23c   : > { %3084 = vmatmul.msk.f32.gmra.mxu3 %vm597_vm0, %v3970_v14 }
 0x243   : > { %3081 = vmatmul.msk.f32.gmra.mxu2 %vm597_vm0, %v3994_v18 }
 0x244   : > { %3085 = vmatmul.msk.f32.gmra.mxu3 %vm597_vm0, %v3994_v18 }
 0x2ae   : > { %v925_v33 = vpop.f32.mrf.mxu2 }
 0x2af   : > { %v954_v35 = vpop.f32.mrf.mxu3  ;;  %v926_v62 = vadd.f32 %v925_v33, %v867_v30 }
 0x2b0   : > { %v955_v1 = vadd.f32 %v954_v35, %v896_v31 }
 0x2b2   : > { %v967_v30 = vadd.f32 %v955_v1, %v4039_v57 }
 0x2b6   : > { %v928_v40 = vpop.f32.mrf.mxu2 }
 0x2b7   : > { %v957_v41 = vpop.f32.mrf.mxu3  ;;  %v929_v56 = vadd.f32 %v928_v40, %v870_v36  ;;  %v966_v36 = vadd.f32 %v926_v62, %v4039_v57 }
 0x2b8   : > { %v958_v60 = vadd.f32 %v957_v41, %v899_v38 }
 0x2be   : > { %v931_v44 = vpop.f32.mrf.mxu2 }
 0x2bf   : > { %v960_v45 = vpop.f32.mrf.mxu3  ;;  %v932_v48 = vadd.f32 %v931_v44, %v873_v42  ;;  %v968_v42 = vadd.f32 %v929_v56, %v4027_v37 }
 0x2c0   : > { %v961_v51 = vadd.f32 %v960_v45, %v902_v43  ;;  %v969_v43 = vadd.f32 %v958_v60, %v4027_v37 }
 0x2c1   : > { %v970_v63 = vadd.f32 %v932_v48, %v4029_v47 }
 0x2c2   : > { %v971_v4 = vadd.f32 %v961_v51, %v4029_v47 }
 0x2c6   : > { %v934_v52 = vpop.f32.mrf.mxu2 }
 0x2c7   : > { %v935_v58 = vadd.f32 %v934_v52, %v876_v46  ;;  %v963_v59 = vpop.f32.mrf.mxu3 }
 0x2c8   : > { %v964_v61 = vadd.f32 %v963_v59, %v905_v49 }
 0x2c9   : > { %v972_v0 = vadd.f32 %v935_v58, %v4025_v32 }
 0x2ca   : > { %v973_v9 = vadd.f32 %v964_v61, %v4025_v32 }
 0x2cb   : > { %3411 = vtanh.f32 %v972_v0 }
 0x2cc   : > { %3413 = vtanh.f32 %v973_v9 }
 0x2cd   : > { %3415 = vtanh.f32 %v970_v63 }
 0x2ce   : > { %3417 = vtanh.f32 %v971_v4 }
 0x2cf   : > { %3419 = vtanh.f32 %v968_v42 }
 0x2d0   : > { %3421 = vtanh.f32 %v969_v43 }
 0x2d1   : > { %v3412_v33 = vpop.eup %3411  ;;  %3423 = vtanh.f32 %v966_v36 }
 0x2d2   : > { %v3414_v31 = vpop.eup %3413  ;;  %3425 = vtanh.f32 %v967_v30  ;;  %994 = vmatpush.msrb.mxu0 %v3412_v33 }
 0x2d3   : > { %v3416_v35 = vpop.eup %3415  ;;  %1023 = vmatpush.msrb.mxu1 %v3414_v31 }
 0x2d4   : > { %v3418_v38 = vpop.eup %3417  ;;  %995 = vmatpush.msrb.mxu0 %v3416_v35 }
 0x2d5   : > { %v3420_v40 = vpop.eup %3419  ;;  %1024 = vmatpush.msrb.mxu1 %v3418_v38 }
 0x2d6   : > { %v3422_v41 = vpop.eup %3421  ;;  %996 = vmatpush.msrb.mxu0 %v3420_v40 }
 0x2d7   : > { %v3424_v44 = vpop.eup %3423  ;;  %1025 = vmatpush.msrb.mxu1 %v3422_v41 }
 0x2d8   : > { %v3426_v45 = vpop.eup %3425  ;;  %997 = vmatpush.msrb.mxu0 %v3424_v44  ;;  %v1126_v44 = vld.sshfl [vmem:[#allocation1] sm:$0xff pattern:$0x75316420] }
 0x2d9   : > { %1026 = vmatpush.msrb.mxu1 %v3426_v45  ;;  %3086 = vmatmul.msk.f32.vlgmr.msrb.gmra.mxu0 %vm597_vm0, %v4050_v5  ;;  %v1127_v45 = vld.sshfl [vmem:[#allocation1 + $0x8] sm:$0xff pattern:$0x75316420] }
 0x2da   : > { %3090 = vmatmul.msk.f32.vlgmr.msrb.gmra.mxu1 %vm597_vm0, %v4050_v5  ;;  %3103 = vmatpush.msk.msra.mxu0 %vm534_vm1, %v1126_v44 }
 0x2db   : > { %3108 = vmatpush.msk.msra.mxu1 %vm534_vm1, %v1127_v45 }
 0x2e1   : > { %3087 = vmatmul.msk.f32.gmra.mxu0 %vm597_vm0, %v4062_v11 }
 0x2e2   : > { %3091 = vmatmul.msk.f32.gmra.mxu1 %vm597_vm0, %v4062_v11 }
 0x2e9   : > { %3088 = vmatmul.msk.f32.gmra.mxu0 %vm597_vm0, %v4074_v15 }
 0x2ea   : > { %3092 = vmatmul.msk.f32.gmra.mxu1 %vm597_vm0, %v4074_v15 }
 0x2f1   : > { %3089 = vmatmul.msk.f32.gmra.mxu0 %vm597_vm0, %v4086_v19 }
 0x2f2   : > { %3093 = vmatmul.msk.f32.gmra.mxu1 %vm597_vm0, %v4086_v19 }
 0x2f9   : > { %3104 = vmatmul.msk.f32.vlgmr.msra.gmra.mxu0 %vm521_vm2, %v3939_v7 }
 0x2fa   : > { %3109 = vmatmul.msk.f32.vlgmr.msra.gmra.mxu1 %vm521_vm2, %v3939_v7 }
 0x301   : > { %3105 = vmatmul.msk.f32.gmra.mxu0 %vm521_vm2, %v3965_v13 }
 0x302   : > { %3110 = vmatmul.msk.f32.gmra.mxu1 %vm521_vm2, %v3965_v13 }
 0x309   : > { %3106 = vmatmul.msk.f32.gmra.mxu0 %vm521_vm2, %v3989_v17 }
 0x30a   : > { %3111 = vmatmul.msk.f32.gmra.mxu1 %vm521_vm2, %v3989_v17 }
 0x311   : > { %3107 = vmatmul.msk.f32.gmra.mxu0 %vm521_vm2, %v4013_v21 }
 0x312   : > { %3112 = vmatmul.msk.f32.gmra.mxu1 %vm521_vm2, %v4013_v21 }
 0x356   : > { %v999_v46 = vpop.f32.mrf.mxu0 }
 0x357   : > { %v1028_v48 = vpop.f32.mrf.mxu1  ;;  %v1000_v4 = vadd.f32 %v999_v46, %v4103_v39  ;;  %v3137_v46 = vld [vmem:[%s3913_s27 + $0x18] sm:$0xff] }
 0x358   : > { %v1029_v9 = vadd.f32 %v1028_v48, %v4103_v39  ;;  %1407 = vst [vmem:[#allocation1] ss:$2 sm:$0xff] %v3137_v46 }
 0x35e   : > { %v1002_v49 = vpop.f32.mrf.mxu0 }
 0x35f   : > { %v1031_v51 = vpop.f32.mrf.mxu1  ;;  %v1003_v0 = vadd.f32 %v1002_v49, %v4098_v34 }
 0x360   : > { %v1032_v1 = vadd.f32 %v1031_v51, %v4098_v34 }
 0x366   : > { %v1005_v52 = vpop.f32.mrf.mxu0 }
 0x367   : > { %v1034_v56 = vpop.f32.mrf.mxu1  ;;  %v1006_v59 = vadd.f32 %v1005_v52, %v4094_v28 }
 0x368   : > { %v1035_v62 = vadd.f32 %v1034_v56, %v4094_v28 }
 0x36e   : > { %v1008_v58 = vpop.f32.mrf.mxu0 }
 0x36f   : > { %v1009_v60 = vadd.f32 %v1008_v58, %v4092_v25  ;;  %v1037_v61 = vpop.f32.mrf.mxu1 }
 0x370   : > { %v1038_v63 = vadd.f32 %v1037_v61, %v4092_v25 }
 0x371   : > { %3427 = vtanh.f32 %v1009_v60 }
 0x372   : > { %3429 = vtanh.f32 %v1038_v63 }
 0x373   : > { %3431 = vtanh.f32 %v1006_v59 }
 0x374   : > { %3433 = vtanh.f32 %v1035_v62 }
 0x375   : > { %3435 = vtanh.f32 %v1003_v0 }
 0x376   : > { %3437 = vtanh.f32 %v1032_v1 }
 0x377   : > { %v3428_v42 = vpop.eup %3427  ;;  %3439 = vtanh.f32 %v1000_v4 }
 0x378   : > { %v3430_v43 = vpop.eup %3429  ;;  %3441 = vtanh.f32 %v1029_v9  ;;  %1060 = vmatpush.msrb.mxu2 %v3428_v42 }
 0x379   : > { %v3432_v36 = vpop.eup %3431  ;;  %1089 = vmatpush.msrb.mxu3 %v3430_v43 }
 0x37a   : > { %v3434_v30 = vpop.eup %3433  ;;  %1061 = vmatpush.msrb.mxu2 %v3432_v36 }
 0x37b   : > { %v3436_v33 = vpop.eup %3435  ;;  %1090 = vmatpush.msrb.mxu3 %v3434_v30 }
 0x37c   : > { %v3438_v31 = vpop.eup %3437  ;;  %1062 = vmatpush.msrb.mxu2 %v3436_v33 }
 0x37d   : > { %v3440_v35 = vpop.eup %3439  ;;  %1091 = vmatpush.msrb.mxu3 %v3438_v31 }
 0x37e   : > { %v3442_v38 = vpop.eup %3441  ;;  %1063 = vmatpush.msrb.mxu2 %v3440_v35 }
 0x37f   : > { %1092 = vmatpush.msrb.mxu3 %v3442_v38  ;;  %3094 = vmatmul.msk.f32.vlgmr.msrb.gmra.mxu2 %vm597_vm0, %v4111_v50 }
 0x380   : > { %3098 = vmatmul.msk.f32.vlgmr.msrb.gmra.mxu3 %vm597_vm0, %v4111_v50 }
 0x387   : > { %3095 = vmatmul.msk.f32.gmra.mxu2 %vm597_vm0, %v4120_v53 }
 0x388   : > { %3099 = vmatmul.msk.f32.gmra.mxu3 %vm597_vm0, %v4120_v53 }
 0x38f   : > { %3096 = vmatmul.msk.f32.gmra.mxu2 %vm597_vm0, %v4129_v54 }
 0x390   : > { %3100 = vmatmul.msk.f32.gmra.mxu3 %vm597_vm0, %v4129_v54 }
 0x397   : > { %3097 = vmatmul.msk.f32.gmra.mxu2 %vm597_vm0, %v4138_v55 }
 0x398   : > { %3101 = vmatmul.msk.f32.gmra.mxu3 %vm597_vm0, %v4138_v55 }
 0x402   : > { %v1065_v40 = vpop.f32.mrf.mxu2 }
 0x403   : > { %v1094_v41 = vpop.f32.mrf.mxu3  ;;  %v1106_v4 = vadd.f32 %v1065_v40, %v4194_v27 }
 0x40a   : > { %v1068_v48 = vpop.f32.mrf.mxu2 }
 0x40b   : > { %v1097_v49 = vpop.f32.mrf.mxu3  ;;  %v1108_v62 = vadd.f32 %v1068_v48, %v4180_v23 }
 0x40c   : > { %v1109_v0 = vadd.f32 %v1097_v49, %v4188_v26  ;;  %v4317_v26 = vadd.f32 %v1106_v4, %v4185_v24 }
 0x40e   : > { %v4311_v23 = vadd.f32 %v1109_v0, %v4173_v20 }
 0x412   : > { %v1071_v51 = vpop.f32.mrf.mxu2 }
 0x413   : > { %v1100_v52 = vpop.f32.mrf.mxu3  ;;  %v1110_v58 = vadd.f32 %v1071_v51, %v4170_v16 }
 0x414   : > { %v1111_v60 = vadd.f32 %v1100_v52, %v4176_v22  ;;  %v4305_v22 = vadd.f32 %v1108_v62, %v4173_v20 }
 0x415   : > { %v4296_v16 = vadd.f32 %v1110_v58, %v4164_v10 }
 0x41a   : > { %v1074_v56 = vpop.f32.mrf.mxu2 }
 0x41b   : > { %v1112_v7 = vadd.f32 %v1074_v56, %v4162_v6  ;;  %v1103_v59 = vpop.f32.mrf.mxu3  ;;  %v1107_v6 = vadd.f32 %v1094_v41, %v4198_v29  ;;  %v1149_v29 = vpop.f32.mrf.mxu0 }
 0x41c   : > { %v1113_v61 = vadd.f32 %v1103_v59, %v4167_v12  ;;  %v4301_v12 = vadd.f32 %v1111_v60, %v4164_v10 }
 0x41d   : > { %v4288_v63 = vadd.f32 %v1112_v7, %v4155_v3  ;;  %v4321_v27 = vadd.f32 %v1107_v6, %v4185_v24 }
 0x41e   : > { %v4292_v1 = vadd.f32 %v1113_v61, %v4155_v3 }
 0x41f   : > { %1202 = vmatpush.msra.mxu2 %v4288_v63 }
 0x420   : > { %1231 = vmatpush.msra.mxu3 %v4292_v1 }
 0x421   : > { %1203 = vmatpush.msra.mxu2 %v4296_v16 }
 0x422   : > { %1232 = vmatpush.msra.mxu3 %v4301_v12 }
 0x423   : > { %1204 = vmatpush.msra.mxu2 %v4305_v22  ;;  %v1152_v43 = vpop.f32.mrf.mxu0 }
 0x424   : > { %1233 = vmatpush.msra.mxu3 %v4311_v23 }
 0x425   : > { %1205 = vmatpush.msra.mxu2 %v4317_v26 }
 0x426   : > { %1234 = vmatpush.msra.mxu3 %v4321_v27  ;;  %3113 = vmatmul.msk.f32.vlgmr.msra.gmra.mxu2 %vm597_vm0, %v3922_v2 }
 0x427   : > { %3117 = vmatmul.msk.f32.vlgmr.msra.gmra.mxu3 %vm597_vm0, %v3922_v2  ;;  %v1178_v2 = vpop.f32.mrf.mxu1 }
 0x42b   : > { %v1155_v33 = vpop.f32.mrf.mxu0 }
 0x42e   : > { %3114 = vmatmul.msk.f32.gmra.mxu2 %vm597_vm0, %v3944_v8 }
 0x42f   : > { %3118 = vmatmul.msk.f32.gmra.mxu3 %vm597_vm0, %v3944_v8  ;;  %v1181_v36 = vpop.f32.mrf.mxu1 }
 0x433   : > { %v1158_v40 = vpop.f32.mrf.mxu0 }
 0x436   : > { %3115 = vmatmul.msk.f32.gmra.mxu2 %vm597_vm0, %v3970_v14 }
 0x437   : > { %3119 = vmatmul.msk.f32.gmra.mxu3 %vm597_vm0, %v3970_v14  ;;  %v1184_v31 = vpop.f32.mrf.mxu1 }
 0x43e   : > { %3116 = vmatmul.msk.f32.gmra.mxu2 %vm597_vm0, %v3994_v18 }
 0x43f   : > { %3120 = vmatmul.msk.f32.gmra.mxu3 %vm597_vm0, %v3994_v18  ;;  %v1187_v41 = vpop.f32.mrf.mxu1 }
 0x4a9   : > { %v1207_v9 = vpop.f32.mrf.mxu2 }
 0x4aa   : > { %v1236_v42 = vpop.f32.mrf.mxu3  ;;  %v1208_v52 = vadd.f32 %v1207_v9, %v1149_v29 }
 0x4ab   : > { %v1237_v7 = vadd.f32 %v1236_v42, %v1178_v2 }
 0x4ac   : > { %v1248_v0 = vadd.f32 %v1208_v52, %v4039_v57 }
 0x4ad   : > { %v1249_v4 = vadd.f32 %v1237_v7, %v4039_v57 }
 0x4b1   : > { %v1210_v30 = vpop.f32.mrf.mxu2 }
 0x4b2   : > { %v1239_v8 = vpop.f32.mrf.mxu3  ;;  %v1211_v46 = vadd.f32 %v1210_v30, %v1152_v43 }
 0x4b3   : > { %v1240_v49 = vadd.f32 %v1239_v8, %v1181_v36 }
 0x4b4   : > { %v1250_v61 = vadd.f32 %v1211_v46, %v4027_v37 }
 0x4b5   : > { %v1251_v62 = vadd.f32 %v1240_v49, %v4027_v37 }
 0x4b9   : > { %v1213_v35 = vpop.f32.mrf.mxu2 }
 0x4ba   : > { %v1242_v38 = vpop.f32.mrf.mxu3  ;;  %v1214_v14 = vadd.f32 %v1213_v35, %v1155_v33 }
 0x4bb   : > { %v1243_v44 = vadd.f32 %v1242_v38, %v1184_v31 }
 0x4bc   : > { %v1252_v56 = vadd.f32 %v1214_v14, %v4029_v47 }
 0x4bd   : > { %v1253_v59 = vadd.f32 %v1243_v44, %v4029_v47 }
 0x4c1   : > { %v1216_v45 = vpop.f32.mrf.mxu2 }
 0x4c2   : > { %v1217_v48 = vadd.f32 %v1216_v45, %v1158_v40  ;;  %v1245_v18 = vpop.f32.mrf.mxu3 }
 0x4c3   : > { %v1246_v51 = vadd.f32 %v1245_v18, %v1187_v41 }
 0x4c4   : > { %v1254_v58 = vadd.f32 %v1217_v48, %v4025_v32 }
 0x4c5   : > { %v1255_v60 = vadd.f32 %v1246_v51, %v4025_v32 }
 0x4c6   : > { %3443 = vtanh.f32 %v1254_v58 }
 0x4c7   : > { %3445 = vtanh.f32 %v1255_v60 }
 0x4c8   : > { %3447 = vtanh.f32 %v1252_v56 }
 0x4c9   : > { %3449 = vtanh.f32 %v1253_v59 }
 0x4ca   : > { %3451 = vtanh.f32 %v1250_v61 }
 0x4cb   : > { %3453 = vtanh.f32 %v1251_v62 }
 0x4cc   : > { %v3444_v6 = vpop.eup %3443  ;;  %3455 = vtanh.f32 %v1248_v0 }
 0x4cd   : > { %v3446_v29 = vpop.eup %3445  ;;  %3457 = vtanh.f32 %v1249_v4  ;;  %1276 = vmatpush.msrb.mxu0 %v3444_v6  ;;  %v1408_v6 = vld.sshfl [vmem:[#allocation1] sm:$0xff pattern:$0x75316420] }
 0x4ce   : > { %v3448_v2 = vpop.eup %3447  ;;  %1305 = vmatpush.msrb.mxu1 %v3446_v29  ;;  %v1409_v29 = vld.sshfl [vmem:[#allocation1 + $0x8] sm:$0xff pattern:$0x75316420] }
 0x4cf   : > { %v3450_v9 = vpop.eup %3449  ;;  %1277 = vmatpush.msrb.mxu0 %v3448_v2  ;;  %v3172_v2 = vld [vmem:[%s3913_s27 + $0x20] sm:$0xff] }
 0x4d0   : > { %v3452_v42 = vpop.eup %3451  ;;  %1306 = vmatpush.msrb.mxu1 %v3450_v9  ;;  %1689 = vst [vmem:[#allocation1] ss:$2 sm:$0xff] %v3172_v2  ;;  %v4396_v9 = vld [vmem:[%s5155_s2] sm:$0xff] }
 0x4d1   : > { %v3454_v43 = vpop.eup %3453  ;;  %1278 = vmatpush.msrb.mxu0 %v3452_v42 }
 0x4d2   : > { %v3456_v36 = vpop.eup %3455  ;;  %1307 = vmatpush.msrb.mxu1 %v3454_v43 }
 0x4d3   : > { %v3458_v30 = vpop.eup %3457  ;;  %1279 = vmatpush.msrb.mxu0 %v3456_v36 }
 0x4d4   : > { %1308 = vmatpush.msrb.mxu1 %v3458_v30  ;;  %3121 = vmatmul.msk.f32.vlgmr.msrb.gmra.mxu0 %vm597_vm0, %v4050_v5 }
 0x4d5   : > { %3125 = vmatmul.msk.f32.vlgmr.msrb.gmra.mxu1 %vm597_vm0, %v4050_v5  ;;  %3138 = vmatpush.msk.msra.mxu0 %vm534_vm1, %v1408_v6 }
 0x4d6   : > { %3143 = vmatpush.msk.msra.mxu1 %vm534_vm1, %v1409_v29 }
 0x4dc   : > { %3122 = vmatmul.msk.f32.gmra.mxu0 %vm597_vm0, %v4062_v11 }
 0x4dd   : > { %3126 = vmatmul.msk.f32.gmra.mxu1 %vm597_vm0, %v4062_v11 }
 0x4e4   : > { %3123 = vmatmul.msk.f32.gmra.mxu0 %vm597_vm0, %v4074_v15 }
 0x4e5   : > { %3127 = vmatmul.msk.f32.gmra.mxu1 %vm597_vm0, %v4074_v15 }
 0x4ec   : > { %3124 = vmatmul.msk.f32.gmra.mxu0 %vm597_vm0, %v4086_v19 }
 0x4ed   : > { %3128 = vmatmul.msk.f32.gmra.mxu1 %vm597_vm0, %v4086_v19 }
 0x4f4   : > { %3139 = vmatmul.msk.f32.vlgmr.msra.gmra.mxu0 %vm521_vm2, %v4396_v9 }
 0x4f5   : > { %3144 = vmatmul.msk.f32.vlgmr.msra.gmra.mxu1 %vm521_vm2, %v4396_v9 }
 0x4fc   : > { %3140 = vmatmul.msk.f32.gmra.mxu0 %vm521_vm2, %v3965_v13 }
 0x4fd   : > { %3145 = vmatmul.msk.f32.gmra.mxu1 %vm521_vm2, %v3965_v13 }
 0x504   : > { %3141 = vmatmul.msk.f32.gmra.mxu0 %vm521_vm2, %v3989_v17 }
 0x505   : > { %3146 = vmatmul.msk.f32.gmra.mxu1 %vm521_vm2, %v3989_v17 }
 0x50c   : > { %3142 = vmatmul.msk.f32.gmra.mxu0 %vm521_vm2, %v4013_v21 }
 0x551   : > { %v1281_v8 = vpop.f32.mrf.mxu0 }
 0x552   : > { %v1310_v5 = vpop.f32.mrf.mxu1  ;;  %v1282_v49 = vadd.f32 %v1281_v8, %v4103_v39 }
 0x553   : > { %v1311_v51 = vadd.f32 %v1310_v5, %v4103_v39 }
 0x559   : > { %v1284_v33 = vpop.f32.mrf.mxu0 }
 0x55a   : > { %v1313_v31 = vpop.f32.mrf.mxu1  ;;  %v1285_v48 = vadd.f32 %v1284_v33, %v4098_v34 }
 0x55b   : > { %v1314_v18 = vadd.f32 %v1313_v31, %v4098_v34 }
 0x561   : > { %v1287_v35 = vpop.f32.mrf.mxu0 }
 0x562   : > { %v1316_v38 = vpop.f32.mrf.mxu1  ;;  %v1288_v14 = vadd.f32 %v1287_v35, %v4094_v28 }
 0x563   : > { %v1317_v45 = vadd.f32 %v1316_v38, %v4094_v28 }
 0x569   : > { %v1290_v40 = vpop.f32.mrf.mxu0 }
 0x56a   : > { %v1291_v41 = vadd.f32 %v1290_v40, %v4092_v25  ;;  %v1319_v44 = vpop.f32.mrf.mxu1 }
 0x56b   : > { %v1320_v46 = vadd.f32 %v1319_v44, %v4092_v25  ;;  %v4471_v44 = vld [vmem:[%s5154_s1 + $0x8] sm:$0xff] }
 0x56c   : > { %3459 = vtanh.f32 %v1291_v41 }
 0x56d   : > { %3461 = vtanh.f32 %v1320_v46  ;;  %v4489_v46 = vld [vmem:[%s5154_s1 + $0x18] sm:$0xff] }
 0x56e   : > { %3463 = vtanh.f32 %v1288_v14 }
 0x56f   : > { %3465 = vtanh.f32 %v1317_v45  ;;  %v4480_v45 = vld [vmem:[%s5154_s1 + $0x10] sm:$0xff] }
 0x570   : > { %3467 = vtanh.f32 %v1285_v48 }
 0x571   : > { %3469 = vtanh.f32 %v1314_v18  ;;  %v1431_v48 = vpop.f32.mrf.mxu0 }
 0x572   : > { %v3460_v52 = vpop.eup %3459  ;;  %3471 = vtanh.f32 %v1282_v49  ;;  %v1460_v18 = vpop.f32.mrf.mxu1 }
 0x573   : > { %v3462_v56 = vpop.eup %3461  ;;  %3473 = vtanh.f32 %v1311_v51  ;;  %1342 = vmatpush.msrb.mxu2 %v3460_v52 }
 0x574   : > { %v3464_v58 = vpop.eup %3463  ;;  %1371 = vmatpush.msrb.mxu3 %v3462_v56 }
 0x575   : > { %v3466_v7 = vpop.eup %3465  ;;  %1343 = vmatpush.msrb.mxu2 %v3464_v58 }
 0x576   : > { %v3468_v59 = vpop.eup %3467  ;;  %1372 = vmatpush.msrb.mxu3 %v3466_v7 }
 0x577   : > { %v3470_v60 = vpop.eup %3469  ;;  %1344 = vmatpush.msrb.mxu2 %v3468_v59 }
 0x578   : > { %v3472_v61 = vpop.eup %3471  ;;  %1373 = vmatpush.msrb.mxu3 %v3470_v60 }
 0x579   : > { %v3474_v62 = vpop.eup %3473  ;;  %1345 = vmatpush.msrb.mxu2 %v3472_v61  ;;  %v1434_v52 = vpop.f32.mrf.mxu0 }
 0x57a   : > { %1374 = vmatpush.msrb.mxu3 %v3474_v62  ;;  %3129 = vmatmul.msk.f32.vlgmr.msrb.gmra.mxu2 %vm597_vm0, %v4111_v50  ;;  %v1463_v56 = vpop.f32.mrf.mxu1 }
 0x57b   : > { %3133 = vmatmul.msk.f32.vlgmr.msrb.gmra.mxu3 %vm597_vm0, %v4111_v50 }
 0x581   : > { %v1437_v59 = vpop.f32.mrf.mxu0 }
 0x582   : > { %3130 = vmatmul.msk.f32.gmra.mxu2 %vm597_vm0, %v4120_v53  ;;  %v1466_v60 = vpop.f32.mrf.mxu1 }
 0x583   : > { %3134 = vmatmul.msk.f32.gmra.mxu3 %vm597_vm0, %v4120_v53 }
 0x58a   : > { %3131 = vmatmul.msk.f32.gmra.mxu2 %vm597_vm0, %v4129_v54 }
 0x58b   : > { %3135 = vmatmul.msk.f32.gmra.mxu3 %vm597_vm0, %v4129_v54 }
 0x592   : > { %3132 = vmatmul.msk.f32.gmra.mxu2 %vm597_vm0, %v4138_v55 }
 0x593   : > { %3136 = vmatmul.msk.f32.gmra.mxu3 %vm597_vm0, %v4138_v55 }
 0x5fd   : > { %v1347_v0 = vpop.f32.mrf.mxu2 }
 0x5fe   : > { %v1376_v4 = vpop.f32.mrf.mxu3  ;;  %v1388_v17 = vadd.f32 %v1347_v0, %v4317_v26  ;;  %v1440_v0 = vpop.f32.mrf.mxu0 }
 0x600   : > { %v4450_v26 = vadd.f32 %v1388_v17, %v4185_v24 }
 0x605   : > { %v1350_v42 = vpop.f32.mrf.mxu2 }
 0x606   : > { %v1379_v43 = vpop.f32.mrf.mxu3  ;;  %v1390_v13 = vadd.f32 %v1350_v42, %v4305_v22 }
 0x607   : > { %v1391_v14 = vadd.f32 %v1379_v43, %v4311_v23  ;;  %v4445_v23 = vld [vmem:[%s5155_s2 + $0x18] sm:$0xff] }
 0x608   : > { %3147 = vmatmul.msk.f32.gmra.mxu1 %vm521_vm2, %v4445_v23 }
 0x609   : > { %v4439_v22 = vadd.f32 %v1391_v14, %v4173_v20 }
 0x60d   : > { %v1353_v36 = vpop.f32.mrf.mxu2 }
 0x60e   : > { %v1382_v30 = vpop.f32.mrf.mxu3  ;;  %v1392_v5 = vadd.f32 %v1353_v36, %v4296_v16 }
 0x60f   : > { %v1393_v35 = vadd.f32 %v1382_v30, %v4301_v12  ;;  %v4433_v12 = vadd.f32 %v1390_v13, %v4173_v20 }
 0x610   : > { %v4424_v16 = vadd.f32 %v1392_v5, %v4164_v10 }
 0x615   : > { %v1356_v8 = vpop.f32.mrf.mxu2 }
 0x616   : > { %v1394_v33 = vadd.f32 %v1356_v8, %v4288_v63  ;;  %v1385_v31 = vpop.f32.mrf.mxu3  ;;  %v1389_v63 = vadd.f32 %v1376_v4, %v4321_v27  ;;  %v4462_v27 = vld [vmem:[%s5154_s1] sm:$0xff] }
 0x617   : > { %v1395_v38 = vadd.f32 %v1385_v31, %v4292_v1  ;;  %v4429_v1 = vadd.f32 %v1393_v35, %v4164_v10 }
 0x618   : > { %v4416_v40 = vadd.f32 %v1394_v33, %v4155_v3  ;;  %v4454_v21 = vadd.f32 %v1389_v63, %v4185_v24 }
 0x619   : > { %v4420_v41 = vadd.f32 %v1395_v38, %v4155_v3 }
 0x61a   : > { %1484 = vmatpush.msra.mxu2 %v4416_v40 }
 0x61b   : > { %1513 = vmatpush.msra.mxu3 %v4420_v41 }
 0x61c   : > { %1485 = vmatpush.msra.mxu2 %v4424_v16 }
 0x61d   : > { %1514 = vmatpush.msra.mxu3 %v4429_v1 }
 0x61e   : > { %1486 = vmatpush.msra.mxu2 %v4433_v12 }
 0x61f   : > { %1515 = vmatpush.msra.mxu3 %v4439_v22 }
 0x620   : > { %1487 = vmatpush.msra.mxu2 %v4450_v26 }
 0x621   : > { %1516 = vmatpush.msra.mxu3 %v4454_v21  ;;  %3148 = vmatmul.msk.f32.vlgmr.msra.gmra.mxu2 %vm597_vm0, %v4462_v27 }
 0x622   : > { %3152 = vmatmul.msk.f32.vlgmr.msra.gmra.mxu3 %vm597_vm0, %v4462_v27 }
 0x629   : > { %3149 = vmatmul.msk.f32.gmra.mxu2 %vm597_vm0, %v4471_v44 }
 0x62a   : > { %3153 = vmatmul.msk.f32.gmra.mxu3 %vm597_vm0, %v4471_v44 }
 0x631   : > { %3150 = vmatmul.msk.f32.gmra.mxu2 %vm597_vm0, %v4480_v45 }
 0x632   : > { %3154 = vmatmul.msk.f32.gmra.mxu3 %vm597_vm0, %v4480_v45 }
 0x639   : > { %3151 = vmatmul.msk.f32.gmra.mxu2 %vm597_vm0, %v4489_v46 }
 0x63a   : > { %3155 = vmatmul.msk.f32.gmra.mxu3 %vm597_vm0, %v4489_v46 }
 0x685   : > { %v1469_v6 = vpop.f32.mrf.mxu1 }
 0x6a4   : > { %v1489_v49 = vpop.f32.mrf.mxu2 }
 0x6a5   : > { %v1518_v51 = vpop.f32.mrf.mxu3  ;;  %v1490_v5 = vadd.f32 %v1489_v49, %v1431_v48 }
 0x6a6   : > { %v1519_v35 = vadd.f32 %v1518_v51, %v1460_v18 }
 0x6a7   : > { %v1530_v63 = vadd.f32 %v1490_v5, %v4039_v57 }
 0x6a8   : > { %v1531_v48 = vadd.f32 %v1519_v35, %v4039_v57 }
 0x6ac   : > { %v1492_v58 = vpop.f32.mrf.mxu2 }
 0x6ad   : > { %v1521_v7 = vpop.f32.mrf.mxu3  ;;  %v1493_v42 = vadd.f32 %v1492_v58, %v1434_v52 }
 0x6ae   : > { %v1522_v30 = vadd.f32 %v1521_v7, %v1463_v56 }
 0x6af   : > { %v1532_v14 = vadd.f32 %v1493_v42, %v4027_v37 }
 0x6b0   : > { %v1533_v17 = vadd.f32 %v1522_v30, %v4027_v37 }
 0x6b4   : > { %v1495_v61 = vpop.f32.mrf.mxu2 }
 0x6b5   : > { %v1524_v62 = vpop.f32.mrf.mxu3  ;;  %v1496_v4 = vadd.f32 %v1495_v61, %v1437_v59 }
 0x6b6   : > { %v1525_v29 = vadd.f32 %v1524_v62, %v1466_v60  ;;  %v4506_v60 = vld [vmem:[%s5157_s4] sm:$0xff] }
 0x6b7   : > { %v1534_v33 = vadd.f32 %v1496_v4, %v4029_v47 }
 0x6b8   : > { %v1535_v38 = vadd.f32 %v1525_v29, %v4029_v47 }
 0x6bc   : > { %v1498_v2 = vpop.f32.mrf.mxu2 }
 0x6bd   : > { %v1499_v43 = vadd.f32 %v1498_v2, %v1440_v0  ;;  %v1527_v36 = vpop.f32.mrf.mxu3 }
 0x6be   : > { %v1528_v8 = vadd.f32 %v1527_v36, %v1469_v6 }
 0x6bf   : > { %v1536_v31 = vadd.f32 %v1499_v43, %v4025_v32 }
 0x6c0   : > { %v1537_v13 = vadd.f32 %v1528_v8, %v4025_v32 }
 0x6c1   : > { %3475 = vtanh.f32 %v1536_v31 }
 0x6c2   : > { %3477 = vtanh.f32 %v1537_v13 }
 0x6c3   : > { %3479 = vtanh.f32 %v1534_v33 }
 0x6c4   : > { %3481 = vtanh.f32 %v1535_v38 }
 0x6c5   : > { %3483 = vtanh.f32 %v1532_v14 }
 0x6c6   : > { %3485 = vtanh.f32 %v1533_v17 }
 0x6c7   : > { %v3476_v49 = vpop.eup %3475  ;;  %3487 = vtanh.f32 %v1530_v63 }
 0x6c8   : > { %v3478_v18 = vpop.eup %3477  ;;  %3489 = vtanh.f32 %v1531_v48  ;;  %1558 = vmatpush.msrb.mxu0 %v3476_v49  ;;  %v1690_v49 = vld.sshfl [vmem:[#allocation1] sm:$0xff pattern:$0x75316420] }
 0x6c9   : > { %v3480_v51 = vpop.eup %3479  ;;  %1587 = vmatpush.msrb.mxu1 %v3478_v18  ;;  %v1691_v18 = vld.sshfl [vmem:[#allocation1 + $0x8] sm:$0xff pattern:$0x75316420] }
 0x6ca   : > { %v3482_v52 = vpop.eup %3481  ;;  %1559 = vmatpush.msrb.mxu0 %v3480_v51 }
 0x6cb   : > { %v3484_v56 = vpop.eup %3483  ;;  %1588 = vmatpush.msrb.mxu1 %v3482_v52 }
 0x6cc   : > { %v3486_v58 = vpop.eup %3485  ;;  %1560 = vmatpush.msrb.mxu0 %v3484_v56  ;;  %v4566_v56 = vld [vmem:[%s5155_s2 + $0x10] sm:$0xff] }
 0x6cd   : > { %v3488_v7 = vpop.eup %3487  ;;  %1589 = vmatpush.msrb.mxu1 %v3486_v58 }
 0x6ce   : > { %v3490_v59 = vpop.eup %3489  ;;  %1561 = vmatpush.msrb.mxu0 %v3488_v7 }
 0x6cf   : > { %1590 = vmatpush.msrb.mxu1 %v3490_v59  ;;  %3156 = vmatmul.msk.f32.vlgmr.msrb.gmra.mxu0 %vm597_vm0, %v4506_v60 }
 0x6d0   : > { %3160 = vmatmul.msk.f32.vlgmr.msrb.gmra.mxu1 %vm597_vm0, %v4506_v60  ;;  %3173 = vmatpush.msk.msra.mxu0 %vm534_vm1, %v1690_v49 }
 0x6d1   : > { %3178 = vmatpush.msk.msra.mxu1 %vm534_vm1, %v1691_v18 }
 0x6d7   : > { %3157 = vmatmul.msk.f32.gmra.mxu0 %vm597_vm0, %v4062_v11 }
 0x6d8   : > { %3161 = vmatmul.msk.f32.gmra.mxu1 %vm597_vm0, %v4062_v11 }
 0x6df   : > { %3158 = vmatmul.msk.f32.gmra.mxu0 %vm597_vm0, %v4074_v15 }
 0x6e0   : > { %3162 = vmatmul.msk.f32.gmra.mxu1 %vm597_vm0, %v4074_v15 }
 0x6e7   : > { %3159 = vmatmul.msk.f32.gmra.mxu0 %vm597_vm0, %v4086_v19 }
 0x6e8   : > { %3163 = vmatmul.msk.f32.gmra.mxu1 %vm597_vm0, %v4086_v19 }
 0x6ef   : > { %3174 = vmatmul.msk.f32.vlgmr.msra.gmra.mxu0 %vm521_vm2, %v4396_v9 }
 0x6f0   : > { %3179 = vmatmul.msk.f32.vlgmr.msra.gmra.mxu1 %vm521_vm2, %v4396_v9 }
 0x74c   : > { %v1563_v61 = vpop.f32.mrf.mxu0 }
 0x74d   : > { %v1592_v62 = vpop.f32.mrf.mxu1  ;;  %v1564_v8 = vadd.f32 %v1563_v61, %v4103_v39 }
 0x74e   : > { %v1593_v5 = vadd.f32 %v1592_v62, %v4103_v39 }
 0x754   : > { %v1566_v0 = vpop.f32.mrf.mxu0 }
 0x755   : > { %v1595_v4 = vpop.f32.mrf.mxu1  ;;  %v1567_v30 = vadd.f32 %v1566_v0, %v4098_v34 }
 0x756   : > { %v1596_v19 = vadd.f32 %v1595_v4, %v4098_v34 }
 0x75c   : > { %v1569_v6 = vpop.f32.mrf.mxu0 }
 0x75d   : > { %v1598_v29 = vpop.f32.mrf.mxu1  ;;  %v1570_v11 = vadd.f32 %v1569_v6, %v4094_v28 }
 0x75e   : > { %v1599_v15 = vadd.f32 %v1598_v29, %v4094_v28 }
 0x764   : > { %v1572_v2 = vpop.f32.mrf.mxu0 }
 0x765   : > { %v1573_v42 = vadd.f32 %v1572_v2, %v4092_v25  ;;  %v1601_v43 = vpop.f32.mrf.mxu1 }
 0x766   : > { %v1602_v36 = vadd.f32 %v1601_v43, %v4092_v25 }
 0x767   : > { %3491 = vtanh.f32 %v1573_v42 }
 0x768   : > { %3493 = vtanh.f32 %v1602_v36 }
 0x769   : > { %3495 = vtanh.f32 %v1570_v11 }
 0x76a   : > { %3497 = vtanh.f32 %v1599_v15 }
 0x76b   : > { %3499 = vtanh.f32 %v1567_v30 }
 0x76c   : > { %3501 = vtanh.f32 %v1596_v19 }
 0x76d   : > { %v3492_v33 = vpop.eup %3491  ;;  %3503 = vtanh.f32 %v1564_v8  ;;  %v1742_v42 = vpop.f32.mrf.mxu1 }
 0x76e   : > { %v3494_v31 = vpop.eup %3493  ;;  %3505 = vtanh.f32 %v1593_v5  ;;  %1624 = vmatpush.msrb.mxu2 %v3492_v33 }
 0x76f   : > { %v3496_v35 = vpop.eup %3495  ;;  %1653 = vmatpush.msrb.mxu3 %v3494_v31 }
 0x770   : > { %v3498_v38 = vpop.eup %3497  ;;  %1625 = vmatpush.msrb.mxu2 %v3496_v35 }
 0x771   : > { %v3500_v13 = vpop.eup %3499  ;;  %1654 = vmatpush.msrb.mxu3 %v3498_v38 }
 0x772   : > { %v3502_v14 = vpop.eup %3501  ;;  %1626 = vmatpush.msrb.mxu2 %v3500_v13 }
 0x773   : > { %v3504_v17 = vpop.eup %3503  ;;  %1655 = vmatpush.msrb.mxu3 %v3502_v14 }
 0x774   : > { %v3506_v63 = vpop.eup %3505  ;;  %1627 = vmatpush.msrb.mxu2 %v3504_v17 }
 0x775   : > { %1656 = vmatpush.msrb.mxu3 %v3506_v63  ;;  %3164 = vmatmul.msk.f32.vlgmr.msrb.gmra.mxu2 %vm597_vm0, %v4111_v50 }
 0x776   : > { %3168 = vmatmul.msk.f32.vlgmr.msrb.gmra.mxu3 %vm597_vm0, %v4111_v50 }
 0x77d   : > { %3165 = vmatmul.msk.f32.gmra.mxu2 %vm597_vm0, %v4120_v53 }
 0x77e   : > { %3169 = vmatmul.msk.f32.gmra.mxu3 %vm597_vm0, %v4120_v53 }
 0x785   : > { %3166 = vmatmul.msk.f32.gmra.mxu2 %vm597_vm0, %v4129_v54 }
 0x786   : > { %3170 = vmatmul.msk.f32.gmra.mxu3 %vm597_vm0, %v4129_v54 }
 0x78d   : > { %3167 = vmatmul.msk.f32.gmra.mxu2 %vm597_vm0, %v4138_v55 }
 0x78e   : > { %3171 = vmatmul.msk.f32.gmra.mxu3 %vm597_vm0, %v4138_v55  ;;  %v4557_v55 = vld [vmem:[%s5155_s2 + $0x8] sm:$0xff] }
 0x78f   : > { %3175 = vmatmul.msk.f32.gmra.mxu0 %vm521_vm2, %v4557_v55  ;;  %3180 = vmatmul.msk.f32.gmra.mxu1 %vm521_vm2, %v4557_v55 }
 0x797   : > { %3176 = vmatmul.msk.f32.gmra.mxu0 %vm521_vm2, %v4566_v56  ;;  %3181 = vmatmul.msk.f32.gmra.mxu1 %vm521_vm2, %v4566_v56 }
 0x79f   : > { %3177 = vmatmul.msk.f32.gmra.mxu0 %vm521_vm2, %v4445_v23  ;;  %3182 = vmatmul.msk.f32.gmra.mxu1 %vm521_vm2, %v4445_v23 }
 0x7f8   : > { %v1629_v48 = vpop.f32.mrf.mxu2 }
 0x7f9   : > { %v1658_v50 = vpop.f32.mrf.mxu3  ;;  %v1670_v11 = vadd.f32 %v1629_v48, %v4450_v26 }
 0x800   : > { %v1632_v53 = vpop.f32.mrf.mxu2 }
 0x801   : > { %v1661_v54 = vpop.f32.mrf.mxu3  ;;  %v1672_v4 = vadd.f32 %v1632_v53, %v4433_v12 }
 0x802   : > { %v1673_v29 = vadd.f32 %v1661_v54, %v4439_v22  ;;  %v4607_v22 = vadd.f32 %v1670_v11, %v4185_v24 }
 0x804   : > { %v4601_v12 = vadd.f32 %v1673_v29, %v4173_v20 }
 0x808   : > { %v1635_v51 = vpop.f32.mrf.mxu2 }
 0x809   : > { %v1664_v52 = vpop.f32.mrf.mxu3  ;;  %v1674_v7 = vadd.f32 %v1635_v51, %v4424_v16 }
 0x80a   : > { %v1675_v62 = vadd.f32 %v1664_v52, %v4429_v1  ;;  %v4595_v1 = vadd.f32 %v1672_v4, %v4173_v20 }
 0x80b   : > { %v4586_v16 = vadd.f32 %v1674_v7, %v4164_v10 }
 0x80c   : > { %v1745_v30 = vpop.f32.mrf.mxu1 }
 0x810   : > { %v1638_v58 = vpop.f32.mrf.mxu2 }
 0x811   : > { %v1676_v59 = vadd.f32 %v1638_v58, %v4416_v40  ;;  %v1667_v61 = vpop.f32.mrf.mxu3  ;;  %v1671_v40 = vadd.f32 %v1658_v50, %v4454_v21  ;;  %v1713_v21 = vpop.f32.mrf.mxu0 }
 0x812   : > { %v1677_v0 = vadd.f32 %v1667_v61, %v4420_v41  ;;  %v4591_v41 = vadd.f32 %v1675_v62, %v4164_v10 }
 0x813   : > { %v4578_v6 = vadd.f32 %v1676_v59, %v4155_v3  ;;  %v4611_v26 = vadd.f32 %v1671_v40, %v4185_v24 }
 0x814   : > { %v4582_v2 = vadd.f32 %v1677_v0, %v4155_v3  ;;  %v1748_v33 = vpop.f32.mrf.mxu1 }
 0x815   : > { %1766 = vmatpush.msra.mxu2 %v4578_v6 }
 0x816   : > { %1795 = vmatpush.msra.mxu3 %v4582_v2 }
 0x817   : > { %1767 = vmatpush.msra.mxu2 %v4586_v16 }
 0x818   : > { %1796 = vmatpush.msra.mxu3 %v4591_v41 }
 0x819   : > { %1768 = vmatpush.msra.mxu2 %v4595_v1  ;;  %v1716_v36 = vpop.f32.mrf.mxu0 }
 0x81a   : > { %1797 = vmatpush.msra.mxu3 %v4601_v12 }
 0x81b   : > { %1769 = vmatpush.msra.mxu2 %v4607_v22 }
 0x81c   : > { %1798 = vmatpush.msra.mxu3 %v4611_v26  ;;  %3183 = vmatmul.msk.f32.vlgmr.msra.gmra.mxu2 %vm597_vm0, %v4462_v27  ;;  %v1751_v14 = vpop.f32.mrf.mxu1 }
 0x81d   : > { %3187 = vmatmul.msk.f32.vlgmr.msra.gmra.mxu3 %vm597_vm0, %v4462_v27 }
 0x821   : > { %v1719_v5 = vpop.f32.mrf.mxu0 }
 0x824   : > { %3184 = vmatmul.msk.f32.gmra.mxu2 %vm597_vm0, %v4471_v44 }
 0x825   : > { %3188 = vmatmul.msk.f32.gmra.mxu3 %vm597_vm0, %v4471_v44 }
 0x829   : > { %v1722_v38 = vpop.f32.mrf.mxu0 }
 0x82c   : > { %3185 = vmatmul.msk.f32.gmra.mxu2 %vm597_vm0, %v4480_v45 }
 0x82d   : > { %3189 = vmatmul.msk.f32.gmra.mxu3 %vm597_vm0, %v4480_v45 }
 0x834   : > { %3186 = vmatmul.msk.f32.gmra.mxu2 %vm597_vm0, %v4489_v46 }
 0x835   : > { %3190 = vmatmul.msk.f32.gmra.mxu3 %vm597_vm0, %v4489_v46 }
 0x89f   : > { %v1771_v43 = vpop.f32.mrf.mxu2 }
 0x8a0   : > { %v1800_v15 = vpop.f32.mrf.mxu3  ;;  %v1772_v54 = vadd.f32 %v1771_v43, %v1713_v21 }
 0x8a1   : > { %v1801_v58 = vadd.f32 %v1800_v15, %v1742_v42 }
 0x8a2   : > { %v1812_v0 = vadd.f32 %v1772_v54, %v4039_v57 }
 0x8a3   : > { %v1813_v4 = vadd.f32 %v1801_v58, %v4039_v57 }
 0x8a7   : > { %v1774_v19 = vpop.f32.mrf.mxu2 }
 0x8a8   : > { %v1803_v8 = vpop.f32.mrf.mxu3  ;;  %v1775_v48 = vadd.f32 %v1774_v19, %v1716_v36  ;;  %v4656_v19 = vld [vmem:[%s5157_s4 + $0x10] sm:$0xff] }
 0x8a9   : > { %v1804_v18 = vadd.f32 %v1803_v8, %v1745_v30  ;;  %v4647_v30 = vld [vmem:[%s5157_s4 + $0x8] sm:$0xff]  ;;  %v4665_v8 = vld [vmem:[%s5157_s4 + $0x18] sm:$0xff] }
 0x8aa   : > { %v1814_v61 = vadd.f32 %v1775_v48, %v4027_v37 }
 0x8ab   : > { %v1815_v62 = vadd.f32 %v1804_v18, %v4027_v37 }
 0x8af   : > { %v1777_v31 = vpop.f32.mrf.mxu2 }
 0x8b0   : > { %v1806_v35 = vpop.f32.mrf.mxu3  ;;  %v1778_v13 = vadd.f32 %v1777_v31, %v1719_v5 }
 0x8b1   : > { %v1807_v17 = vadd.f32 %v1806_v35, %v1748_v33 }
 0x8b2   : > { %v1816_v51 = vadd.f32 %v1778_v13, %v4029_v47 }
 0x8b3   : > { %v1817_v7 = vadd.f32 %v1807_v17, %v4029_v47 }
 0x8b7   : > { %v1780_v63 = vpop.f32.mrf.mxu2 }
 0x8b8   : > { %v1781_v50 = vadd.f32 %v1780_v63, %v1722_v38  ;;  %v1809_v49 = vpop.f32.mrf.mxu3 }
 0x8b9   : > { %v1810_v53 = vadd.f32 %v1809_v49, %v1751_v14 }
 0x8ba   : > { %v1818_v52 = vadd.f32 %v1781_v50, %v4025_v32 }
 0x8bb   : > { %v1819_v59 = vadd.f32 %v1810_v53, %v4025_v32 }
 0x8bc   : > { %3507 = vtanh.f32 %v1818_v52 }
 0x8bd   : > { %3509 = vtanh.f32 %v1819_v59 }
 0x8be   : > { %3511 = vtanh.f32 %v1816_v51 }
 0x8bf   : > { %3513 = vtanh.f32 %v1817_v7 }
 0x8c0   : > { %3515 = vtanh.f32 %v1814_v61 }
 0x8c1   : > { %3517 = vtanh.f32 %v1815_v62 }
 0x8c2   : > { %v3508_v29 = vpop.eup %3507  ;;  %3519 = vtanh.f32 %v1812_v0 }
 0x8c3   : > { %v3510_v11 = vpop.eup %3509  ;;  %3521 = vtanh.f32 %v1813_v4  ;;  %1840 = vmatpush.msrb.mxu0 %v3508_v29  ;;  %v4682_v29 = vld [vmem:[%s5159_s6] sm:$0xff] }
 0x8c4   : > { %v3512_v40 = vpop.eup %3511  ;;  %1869 = vmatpush.msrb.mxu1 %v3510_v11  ;;  %v4691_v11 = vld [vmem:[%s5159_s6 + $0x8] sm:$0xff] }
 0x8c5   : > { %v3514_v21 = vpop.eup %3513  ;;  %1841 = vmatpush.msrb.mxu0 %v3512_v40  ;;  %v4700_v40 = vld [vmem:[%s5159_s6 + $0x10] sm:$0xff] }
 0x8c6   : > { %v3516_v42 = vpop.eup %3515  ;;  %1870 = vmatpush.msrb.mxu1 %v3514_v21  ;;  %v4709_v21 = vld [vmem:[%s5159_s6 + $0x18] sm:$0xff] }
 0x8c7   : > { %v3518_v43 = vpop.eup %3517  ;;  %1842 = vmatpush.msrb.mxu0 %v3516_v42 }
 0x8c8   : > { %v3520_v15 = vpop.eup %3519  ;;  %1871 = vmatpush.msrb.mxu1 %v3518_v43 }
 0x8c9   : > { %v3522_v36 = vpop.eup %3521  ;;  %1843 = vmatpush.msrb.mxu0 %v3520_v15  ;;  %v3207_v15 = vld [vmem:[%s3913_s27 + $0x28] sm:$0xff] }
 0x8ca   : > { %1872 = vmatpush.msrb.mxu1 %v3522_v36  ;;  %3191 = vmatmul.msk.f32.vlgmr.msrb.gmra.mxu0 %vm597_vm0, %v4506_v60  ;;  %1971 = vst [vmem:[#allocation1] ss:$2 sm:$0xff] %v3207_v15 }
 0x8cb   : > { %3195 = vmatmul.msk.f32.vlgmr.msrb.gmra.mxu1 %vm597_vm0, %v4506_v60 }
 0x8d2   : > { %3192 = vmatmul.msk.f32.gmra.mxu0 %vm597_vm0, %v4647_v30 }
 0x8d3   : > { %3196 = vmatmul.msk.f32.gmra.mxu1 %vm597_vm0, %v4647_v30 }
 0x8da   : > { %3193 = vmatmul.msk.f32.gmra.mxu0 %vm597_vm0, %v4656_v19 }
 0x8db   : > { %3197 = vmatmul.msk.f32.gmra.mxu1 %vm597_vm0, %v4656_v19 }
 0x8e2   : > { %3194 = vmatmul.msk.f32.gmra.mxu0 %vm597_vm0, %v4665_v8 }
 0x8e3   : > { %3198 = vmatmul.msk.f32.gmra.mxu1 %vm597_vm0, %v4665_v8 }
 0x947   : > { %v1845_v5 = vpop.f32.mrf.mxu0 }
 0x948   : > { %v1874_v33 = vpop.f32.mrf.mxu1  ;;  %v1846_v54 = vadd.f32 %v1845_v5, %v4103_v39 }
 0x949   : > { %v1875_v51 = vadd.f32 %v1874_v33, %v4103_v39  ;;  %v1972_v33 = vld.sshfl [vmem:[#allocation1] sm:$0xff pattern:$0x75316420] }
 0x94a   : > { %3208 = vmatpush.msk.msra.mxu0 %vm534_vm1, %v1972_v33 }
 0x94b   : > { %3209 = vmatmul.msk.f32.vlgmr.msra.gmra.mxu0 %vm521_vm2, %v4396_v9 }
 0x94f   : > { %v1848_v31 = vpop.f32.mrf.mxu0 }
 0x950   : > { %v1877_v35 = vpop.f32.mrf.mxu1  ;;  %v1849_v18 = vadd.f32 %v1848_v31, %v4098_v34  ;;  %v1973_v31 = vld.sshfl [vmem:[#allocation1 + $0x8] sm:$0xff pattern:$0x75316420] }
 0x951   : > { %v1878_v53 = vadd.f32 %v1877_v35, %v4098_v34  ;;  %3213 = vmatpush.msk.msra.mxu1 %vm534_vm1, %v1973_v31 }
 0x952   : > { %3214 = vmatmul.msk.f32.vlgmr.msra.gmra.mxu1 %vm521_vm2, %v4396_v9 }
 0x953   : > { %3210 = vmatmul.msk.f32.gmra.mxu0 %vm521_vm2, %v4557_v55 }
 0x957   : > { %v1851_v38 = vpop.f32.mrf.mxu0 }
 0x958   : > { %v1880_v13 = vpop.f32.mrf.mxu1  ;;  %v1852_v17 = vadd.f32 %v1851_v38, %v4094_v28 }
 0x959   : > { %v1881_v50 = vadd.f32 %v1880_v13, %v4094_v28 }
 0x95a   : > { %3215 = vmatmul.msk.f32.gmra.mxu1 %vm521_vm2, %v4557_v55 }
 0x95b   : > { %3211 = vmatmul.msk.f32.gmra.mxu0 %vm521_vm2, %v4566_v56 }
 0x95f   : > { %v1854_v14 = vpop.f32.mrf.mxu0 }
 0x960   : > { %v1855_v63 = vadd.f32 %v1854_v14, %v4092_v25  ;;  %v1883_v48 = vpop.f32.mrf.mxu1 }
 0x961   : > { %v1884_v49 = vadd.f32 %v1883_v48, %v4092_v25 }
 0x962   : > { %3523 = vtanh.f32 %v1855_v63  ;;  %3216 = vmatmul.msk.f32.gmra.mxu1 %vm521_vm2, %v4566_v56 }
 0x963   : > { %3525 = vtanh.f32 %v1884_v49  ;;  %3212 = vmatmul.msk.f32.gmra.mxu0 %vm521_vm2, %v4445_v23 }
 0x964   : > { %3527 = vtanh.f32 %v1852_v17 }
 0x965   : > { %3529 = vtanh.f32 %v1881_v50 }
 0x966   : > { %3531 = vtanh.f32 %v1849_v18 }
 0x967   : > { %3533 = vtanh.f32 %v1878_v53 }
 0x968   : > { %v3524_v52 = vpop.eup %3523  ;;  %3535 = vtanh.f32 %v1846_v54 }
 0x969   : > { %v3526_v58 = vpop.eup %3525  ;;  %3537 = vtanh.f32 %v1875_v51  ;;  %1906 = vmatpush.msrb.mxu2 %v3524_v52 }
 0x96a   : > { %v3528_v7 = vpop.eup %3527  ;;  %1935 = vmatpush.msrb.mxu3 %v3526_v58  ;;  %3217 = vmatmul.msk.f32.gmra.mxu1 %vm521_vm2, %v4445_v23 }
 0x96b   : > { %v3530_v59 = vpop.eup %3529  ;;  %1907 = vmatpush.msrb.mxu2 %v3528_v7 }
 0x96c   : > { %v3532_v61 = vpop.eup %3531  ;;  %1936 = vmatpush.msrb.mxu3 %v3530_v59 }
 0x96d   : > { %v3534_v62 = vpop.eup %3533  ;;  %1908 = vmatpush.msrb.mxu2 %v3532_v61 }
 0x96e   : > { %v3536_v0 = vpop.eup %3535  ;;  %1937 = vmatpush.msrb.mxu3 %v3534_v62 }
 0x96f   : > { %v3538_v4 = vpop.eup %3537  ;;  %1909 = vmatpush.msrb.mxu2 %v3536_v0 }
 0x970   : > { %1938 = vmatpush.msrb.mxu3 %v3538_v4  ;;  %3199 = vmatmul.msk.f32.vlgmr.msrb.gmra.mxu2 %vm597_vm0, %v4682_v29 }
 0x971   : > { %3203 = vmatmul.msk.f32.vlgmr.msrb.gmra.mxu3 %vm597_vm0, %v4682_v29 }
 0x978   : > { %3200 = vmatmul.msk.f32.gmra.mxu2 %vm597_vm0, %v4691_v11 }
 0x979   : > { %3204 = vmatmul.msk.f32.gmra.mxu3 %vm597_vm0, %v4691_v11 }
 0x980   : > { %3201 = vmatmul.msk.f32.gmra.mxu2 %vm597_vm0, %v4700_v40 }
 0x981   : > { %3205 = vmatmul.msk.f32.gmra.mxu3 %vm597_vm0, %v4700_v40 }
 0x988   : > { %3202 = vmatmul.msk.f32.gmra.mxu2 %vm597_vm0, %v4709_v21 }
 0x989   : > { %3206 = vmatmul.msk.f32.gmra.mxu3 %vm597_vm0, %v4709_v21 }
 0x9c8   : > { %v1995_v51 = vpop.f32.mrf.mxu0 }
 0x9cf   : > { %v2024_v52 = vpop.f32.mrf.mxu1 }
 0x9d0   : > { %v1998_v59 = vpop.f32.mrf.mxu0 }
 0x9d7   : > { %v2027_v61 = vpop.f32.mrf.mxu1 }
 0x9d8   : > { %v2001_v4 = vpop.f32.mrf.mxu0 }
 0x9f3   : > { %v1911_v42 = vpop.f32.mrf.mxu2 }
 0x9f4   : > { %v1940_v43 = vpop.f32.mrf.mxu3 }
 0x9fb   : > { %v1914_v36 = vpop.f32.mrf.mxu2 }
 0x9fc   : > { %v1943_v5 = vpop.f32.mrf.mxu3  ;;  %v1954_v49 = vadd.f32 %v1914_v36, %v4595_v1  ;;  %v1953_v1 = vadd.f32 %v1940_v43, %v4611_v26  ;;  %v2004_v36 = vpop.f32.mrf.mxu0 }
 0x9fe   : > { %v4753_v54 = vadd.f32 %v1954_v49, %v4173_v20  ;;  %v4765_v26 = vadd.f32 %v1953_v1, %v4185_v24 }
 0xa03   : > { %v1917_v35 = vpop.f32.mrf.mxu2 }
 0xa04   : > { %v1946_v38 = vpop.f32.mrf.mxu3  ;;  %v1956_v14 = vadd.f32 %v1917_v35, %v4586_v16  ;;  %v1955_v16 = vadd.f32 %v1943_v5, %v4601_v12 }
 0xa05   : > { %v1957_v48 = vadd.f32 %v1946_v38, %v4591_v41  ;;  %v1952_v41 = vadd.f32 %v1911_v42, %v4607_v22  ;;  %v2030_v42 = vpop.f32.mrf.mxu1 }
 0xa06   : > { %v4757_v12 = vadd.f32 %v1955_v16, %v4173_v20 }
 0xa07   : > { %v4749_v53 = vadd.f32 %v1957_v48, %v4164_v10  ;;  %v4761_v22 = vadd.f32 %v1952_v41, %v4185_v24 }
 0xa0b   : > { %v1920_v13 = vpop.f32.mrf.mxu2 }
 0xa0c   : > { %v1958_v17 = vadd.f32 %v1920_v13, %v4578_v6  ;;  %v1949_v63 = vpop.f32.mrf.mxu3 }
 0xa0d   : > { %v1959_v50 = vadd.f32 %v1949_v63, %v4582_v2  ;;  %v4744_v2 = vadd.f32 %v1956_v14, %v4164_v10  ;;  %v2033_v33 = vpop.f32.mrf.mxu1 }
 0xa0e   : > { %v4732_v18 = vadd.f32 %v1958_v17, %v4155_v3 }
 0xa0f   : > { %v4740_v6 = vadd.f32 %v1959_v50, %v4155_v3 }
 0xa10   : > { %2048 = vmatpush.msra.mxu2 %v4732_v18 }
 0xa11   : > { %2077 = vmatpush.msra.mxu3 %v4740_v6 }
 0xa12   : > { %2049 = vmatpush.msra.mxu2 %v4744_v2 }
 0xa13   : > { %2078 = vmatpush.msra.mxu3 %v4749_v53 }
 0xa14   : > { %2050 = vmatpush.msra.mxu2 %v4753_v54 }
 0xa15   : > { %2079 = vmatpush.msra.mxu3 %v4757_v12 }
 0xa16   : > { %2051 = vmatpush.msra.mxu2 %v4761_v22 }
 0xa17   : > { %2080 = vmatpush.msra.mxu3 %v4765_v26  ;;  %3218 = vmatmul.msk.f32.vlgmr.msra.gmra.mxu2 %vm597_vm0, %v4462_v27 }
 0xa18   : > { %3222 = vmatmul.msk.f32.vlgmr.msra.gmra.mxu3 %vm597_vm0, %v4462_v27 }
 0xa1f   : > { %3219 = vmatmul.msk.f32.gmra.mxu2 %vm597_vm0, %v4471_v44 }
 0xa20   : > { %3223 = vmatmul.msk.f32.gmra.mxu3 %vm597_vm0, %v4471_v44 }
 0xa27   : > { %3220 = vmatmul.msk.f32.gmra.mxu2 %vm597_vm0, %v4480_v45 }
 0xa28   : > { %3224 = vmatmul.msk.f32.gmra.mxu3 %vm597_vm0, %v4480_v45 }
 0xa2f   : > { %3221 = vmatmul.msk.f32.gmra.mxu2 %vm597_vm0, %v4489_v46 }
 0xa30   : > { %3225 = vmatmul.msk.f32.gmra.mxu3 %vm597_vm0, %v4489_v46 }
 0xa9a   : > { %v2053_v58 = vpop.f32.mrf.mxu2 }
 0xa9b   : > { %v2082_v7 = vpop.f32.mrf.mxu3  ;;  %v2054_v48 = vadd.f32 %v2053_v58, %v1995_v51 }
 0xa9c   : > { %v2083_v16 = vadd.f32 %v2082_v7, %v2024_v52 }
 0xa9e   : > { %v2095_v51 = vadd.f32 %v2083_v16, %v4039_v57 }
 0xaa2   : > { %v2056_v62 = vpop.f32.mrf.mxu2 }
 0xaa3   : > { %v2085_v0 = vpop.f32.mrf.mxu3  ;;  %v2057_v38 = vadd.f32 %v2056_v62, %v1998_v59  ;;  %v2094_v59 = vadd.f32 %v2054_v48, %v4039_v57 }
 0xaa4   : > { %v2086_v17 = vadd.f32 %v2085_v0, %v2027_v61 }
 0xaaa   : > { %v2059_v43 = vpop.f32.mrf.mxu2 }
 0xaab   : > { %v2088_v15 = vpop.f32.mrf.mxu3  ;;  %v2060_v5 = vadd.f32 %v2059_v43, %v2001_v4  ;;  %v2096_v4 = vadd.f32 %v2057_v38, %v4027_v37 }
 0xaac   : > { %v2089_v31 = vadd.f32 %v2088_v15, %v2030_v42  ;;  %v2097_v42 = vadd.f32 %v2086_v17, %v4027_v37 }
 0xaad   : > { %v2098_v50 = vadd.f32 %v2060_v5, %v4029_v47 }
 0xaae   : > { %v2099_v41 = vadd.f32 %v2089_v31, %v4029_v47 }
 0xab2   : > { %v2062_v35 = vpop.f32.mrf.mxu2 }
 0xab3   : > { %v2063_v13 = vadd.f32 %v2062_v35, %v2004_v36  ;;  %v2091_v14 = vpop.f32.mrf.mxu3 }
 0xab4   : > { %v2092_v63 = vadd.f32 %v2091_v14, %v2033_v33 }
 0xab5   : > { %v2100_v49 = vadd.f32 %v2063_v13, %v4025_v32 }
 0xab6   : > { %v2101_v1 = vadd.f32 %v2092_v63, %v4025_v32 }
 0xab7   : > { %3539 = vtanh.f32 %v2100_v49 }
 0xab8   : > { %3541 = vtanh.f32 %v2101_v1 }
 0xab9   : > { %3543 = vtanh.f32 %v2098_v50 }
 0xaba   : > { %3545 = vtanh.f32 %v2099_v41 }
 0xabb   : > { %3547 = vtanh.f32 %v2096_v4 }
 0xabc   : > { %3549 = vtanh.f32 %v2097_v42 }
 0xabd   : > { %v3540_v58 = vpop.eup %3539  ;;  %3551 = vtanh.f32 %v2094_v59 }
 0xabe   : > { %v3542_v52 = vpop.eup %3541  ;;  %3553 = vtanh.f32 %v2095_v51  ;;  %2122 = vmatpush.msrb.mxu0 %v3540_v58 }
 0xabf   : > { %v3544_v7 = vpop.eup %3543  ;;  %2151 = vmatpush.msrb.mxu1 %v3542_v52 }
 0xac0   : > { %v3546_v61 = vpop.eup %3545  ;;  %2123 = vmatpush.msrb.mxu0 %v3544_v7 }
 0xac1   : > { %v3548_v62 = vpop.eup %3547  ;;  %2152 = vmatpush.msrb.mxu1 %v3546_v61 }
 0xac2   : > { %v3550_v0 = vpop.eup %3549  ;;  %2124 = vmatpush.msrb.mxu0 %v3548_v62 }
 0xac3   : > { %v3552_v43 = vpop.eup %3551  ;;  %2153 = vmatpush.msrb.mxu1 %v3550_v0 }
 0xac4   : > { %v3554_v15 = vpop.eup %3553  ;;  %2125 = vmatpush.msrb.mxu0 %v3552_v43  ;;  %v3242_v43 = vld [vmem:[%s3913_s27 + $0x30] sm:$0xff] }
 0xac5   : > { %2154 = vmatpush.msrb.mxu1 %v3554_v15  ;;  %3226 = vmatmul.msk.f32.vlgmr.msrb.gmra.mxu0 %vm597_vm0, %v4506_v60  ;;  %2253 = vst [vmem:[#allocation1] ss:$2 sm:$0xff] %v3242_v43 }
 0xac6   : > { %3230 = vmatmul.msk.f32.vlgmr.msrb.gmra.mxu1 %vm597_vm0, %v4506_v60 }
 0xacd   : > { %3227 = vmatmul.msk.f32.gmra.mxu0 %vm597_vm0, %v4647_v30 }
 0xace   : > { %3231 = vmatmul.msk.f32.gmra.mxu1 %vm597_vm0, %v4647_v30 }
 0xad5   : > { %3228 = vmatmul.msk.f32.gmra.mxu0 %vm597_vm0, %v4656_v19 }
 0xad6   : > { %3232 = vmatmul.msk.f32.gmra.mxu1 %vm597_vm0, %v4656_v19 }
 0xadd   : > { %3229 = vmatmul.msk.f32.gmra.mxu0 %vm597_vm0, %v4665_v8 }
 0xade   : > { %3233 = vmatmul.msk.f32.gmra.mxu1 %vm597_vm0, %v4665_v8 }
 0xb42   : > { %v2127_v36 = vpop.f32.mrf.mxu0 }
 0xb43   : > { %v2156_v5 = vpop.f32.mrf.mxu1  ;;  %v2128_v41 = vadd.f32 %v2127_v36, %v4103_v39 }
 0xb44   : > { %v2157_v1 = vadd.f32 %v2156_v5, %v4103_v39  ;;  %v2254_v5 = vld.sshfl [vmem:[#allocation1] sm:$0xff pattern:$0x75316420] }
 0xb45   : > { %3243 = vmatpush.msk.msra.mxu0 %vm534_vm1, %v2254_v5 }
 0xb46   : > { %3244 = vmatmul.msk.f32.vlgmr.msra.gmra.mxu0 %vm521_vm2, %v4396_v9 }
 0xb4a   : > { %v2130_v33 = vpop.f32.mrf.mxu0 }
 0xb4b   : > { %v2159_v31 = vpop.f32.mrf.mxu1  ;;  %v2131_v49 = vadd.f32 %v2130_v33, %v4098_v34  ;;  %v2255_v33 = vld.sshfl [vmem:[#allocation1 + $0x8] sm:$0xff pattern:$0x75316420] }
 0xb4c   : > { %v2160_v16 = vadd.f32 %v2159_v31, %v4098_v34  ;;  %3248 = vmatpush.msk.msra.mxu1 %vm534_vm1, %v2255_v33 }
 0xb4d   : > { %3249 = vmatmul.msk.f32.vlgmr.msra.gmra.mxu1 %vm521_vm2, %v4396_v9 }
 0xb4e   : > { %3245 = vmatmul.msk.f32.gmra.mxu0 %vm521_vm2, %v4557_v55 }
 0xb52   : > { %v2133_v35 = vpop.f32.mrf.mxu0 }
 0xb53   : > { %v2162_v38 = vpop.f32.mrf.mxu1  ;;  %v2134_v14 = vadd.f32 %v2133_v35, %v4094_v28 }
 0xb54   : > { %v2163_v48 = vadd.f32 %v2162_v38, %v4094_v28 }
 0xb55   : > { %3250 = vmatmul.msk.f32.gmra.mxu1 %vm521_vm2, %v4557_v55 }
 0xb56   : > { %3246 = vmatmul.msk.f32.gmra.mxu0 %vm521_vm2, %v4566_v56 }
 0xb5a   : > { %v2136_v13 = vpop.f32.mrf.mxu0 }
 0xb5b   : > { %v2137_v17 = vadd.f32 %v2136_v13, %v4092_v25  ;;  %v2165_v63 = vpop.f32.mrf.mxu1 }
 0xb5c   : > { %v2166_v50 = vadd.f32 %v2165_v63, %v4092_v25 }
 0xb5d   : > { %3555 = vtanh.f32 %v2137_v17  ;;  %3251 = vmatmul.msk.f32.gmra.mxu1 %vm521_vm2, %v4566_v56 }
 0xb5e   : > { %3557 = vtanh.f32 %v2166_v50  ;;  %3247 = vmatmul.msk.f32.gmra.mxu0 %vm521_vm2, %v4445_v23 }
 0xb5f   : > { %3559 = vtanh.f32 %v2134_v14 }
 0xb60   : > { %3561 = vtanh.f32 %v2163_v48 }
 0xb61   : > { %3563 = vtanh.f32 %v2131_v49 }
 0xb62   : > { %3565 = vtanh.f32 %v2160_v16 }
 0xb63   : > { %v3556_v4 = vpop.eup %3555  ;;  %3567 = vtanh.f32 %v2128_v41 }
 0xb64   : > { %v3558_v42 = vpop.eup %3557  ;;  %3569 = vtanh.f32 %v2157_v1  ;;  %2188 = vmatpush.msrb.mxu2 %v3556_v4 }
 0xb65   : > { %v3560_v59 = vpop.eup %3559  ;;  %2217 = vmatpush.msrb.mxu3 %v3558_v42  ;;  %3252 = vmatmul.msk.f32.gmra.mxu1 %vm521_vm2, %v4445_v23 }
 0xb66   : > { %v3562_v51 = vpop.eup %3561  ;;  %2189 = vmatpush.msrb.mxu2 %v3560_v59 }
 0xb67   : > { %v3564_v58 = vpop.eup %3563  ;;  %2218 = vmatpush.msrb.mxu3 %v3562_v51 }
 0xb68   : > { %v3566_v52 = vpop.eup %3565  ;;  %2190 = vmatpush.msrb.mxu2 %v3564_v58 }
 0xb69   : > { %v3568_v7 = vpop.eup %3567  ;;  %2219 = vmatpush.msrb.mxu3 %v3566_v52 }
 0xb6a   : > { %v3570_v61 = vpop.eup %3569  ;;  %2191 = vmatpush.msrb.mxu2 %v3568_v7 }
 0xb6b   : > { %2220 = vmatpush.msrb.mxu3 %v3570_v61  ;;  %3234 = vmatmul.msk.f32.vlgmr.msrb.gmra.mxu2 %vm597_vm0, %v4682_v29 }
 0xb6c   : > { %3238 = vmatmul.msk.f32.vlgmr.msrb.gmra.mxu3 %vm597_vm0, %v4682_v29 }
 0xb73   : > { %3235 = vmatmul.msk.f32.gmra.mxu2 %vm597_vm0, %v4691_v11 }
 0xb74   : > { %3239 = vmatmul.msk.f32.gmra.mxu3 %vm597_vm0, %v4691_v11 }
 0xb7b   : > { %3236 = vmatmul.msk.f32.gmra.mxu2 %vm597_vm0, %v4700_v40 }
 0xb7c   : > { %3240 = vmatmul.msk.f32.gmra.mxu3 %vm597_vm0, %v4700_v40 }
 0xb83   : > { %3237 = vmatmul.msk.f32.gmra.mxu2 %vm597_vm0, %v4709_v21 }
 0xb84   : > { %3241 = vmatmul.msk.f32.gmra.mxu3 %vm597_vm0, %v4709_v21 }
 0xbca   : > { %v2306_v23 = vpop.f32.mrf.mxu1 }
 0xbd2   : > { %v2309_v42 = vpop.f32.mrf.mxu1 }
 0xbda   : > { %v2312_v58 = vpop.f32.mrf.mxu1 }
 0xbee   : > { %v2193_v62 = vpop.f32.mrf.mxu2 }
 0xbef   : > { %v2222_v0 = vpop.f32.mrf.mxu3 }
 0xbf6   : > { %v2196_v15 = vpop.f32.mrf.mxu2 }
 0xbf7   : > { %v2225_v36 = vpop.f32.mrf.mxu3  ;;  %v2236_v9 = vadd.f32 %v2196_v15, %v4753_v54  ;;  %v2235_v54 = vadd.f32 %v2222_v0, %v4765_v26 }
 0xbf9   : > { %v4876_v16 = vadd.f32 %v2236_v9, %v4173_v20  ;;  %v4888_v26 = vadd.f32 %v2235_v54, %v4185_v24 }
 0xbfe   : > { %v2199_v31 = vpop.f32.mrf.mxu2 }
 0xbff   : > { %v2228_v35 = vpop.f32.mrf.mxu3  ;;  %v2238_v13 = vadd.f32 %v2199_v31, %v4744_v2  ;;  %v2237_v2 = vadd.f32 %v2225_v36, %v4757_v12 }
 0xc00   : > { %v2239_v63 = vadd.f32 %v2228_v35, %v4749_v53  ;;  %v2234_v53 = vadd.f32 %v2193_v62, %v4761_v22  ;;  %v2315_v62 = vpop.f32.mrf.mxu1 }
 0xc01   : > { %v4880_v12 = vadd.f32 %v2237_v2, %v4173_v20 }
 0xc02   : > { %v4872_v49 = vadd.f32 %v2239_v63, %v4164_v10  ;;  %v4884_v22 = vadd.f32 %v2234_v53, %v4185_v24 }
 0xc06   : > { %v2202_v38 = vpop.f32.mrf.mxu2 }
 0xc07   : > { %v2240_v14 = vadd.f32 %v2202_v38, %v4732_v18  ;;  %v2231_v17 = vpop.f32.mrf.mxu3 }
 0xc08   : > { %v2241_v48 = vadd.f32 %v2231_v17, %v4740_v6  ;;  %v4867_v6 = vadd.f32 %v2238_v13, %v4164_v10 }
 0xc09   : > { %v4855_v50 = vadd.f32 %v2240_v14, %v4155_v3 }
 0xc0a   : > { %v4863_v18 = vadd.f32 %v2241_v48, %v4155_v3 }
 0xc0b   : > { %2330 = vmatpush.msra.mxu2 %v4855_v50 }
 0xc0c   : > { %2359 = vmatpush.msra.mxu3 %v4863_v18 }
 0xc0d   : > { %2331 = vmatpush.msra.mxu2 %v4867_v6 }
 0xc0e   : > { %2360 = vmatpush.msra.mxu3 %v4872_v49 }
 0xc0f   : > { %2332 = vmatpush.msra.mxu2 %v4876_v16 }
 0xc10   : > { %2361 = vmatpush.msra.mxu3 %v4880_v12 }
 0xc11   : > { %2333 = vmatpush.msra.mxu2 %v4884_v22 }
 0xc12   : > { %2362 = vmatpush.msra.mxu3 %v4888_v26  ;;  %3253 = vmatmul.msk.f32.vlgmr.msra.gmra.mxu2 %vm597_vm0, %v4462_v27 }
 0xc13   : > { %3257 = vmatmul.msk.f32.vlgmr.msra.gmra.mxu3 %vm597_vm0, %v4462_v27  ;;  %v2277_v27 = vpop.f32.mrf.mxu0 }
 0xc1a   : > { %3254 = vmatmul.msk.f32.gmra.mxu2 %vm597_vm0, %v4471_v44 }
 0xc1b   : > { %3258 = vmatmul.msk.f32.gmra.mxu3 %vm597_vm0, %v4471_v44  ;;  %v2280_v4 = vpop.f32.mrf.mxu0 }
 0xc22   : > { %3255 = vmatmul.msk.f32.gmra.mxu2 %vm597_vm0, %v4480_v45 }
 0xc23   : > { %3259 = vmatmul.msk.f32.gmra.mxu3 %vm597_vm0, %v4480_v45  ;;  %v2283_v51 = vpop.f32.mrf.mxu0 }
 0xc2a   : > { %3256 = vmatmul.msk.f32.gmra.mxu2 %vm597_vm0, %v4489_v46 }
 0xc2b   : > { %3260 = vmatmul.msk.f32.gmra.mxu3 %vm597_vm0, %v4489_v46  ;;  %v2286_v61 = vpop.f32.mrf.mxu0 }
 0xc95   : > { %v2335_v41 = vpop.f32.mrf.mxu2 }
 0xc96   : > { %v2364_v1 = vpop.f32.mrf.mxu3  ;;  %v2336_v31 = vadd.f32 %v2335_v41, %v2277_v27 }
 0xc97   : > { %v2365_v13 = vadd.f32 %v2364_v1, %v2306_v23 }
 0xc98   : > { %v2376_v9 = vadd.f32 %v2336_v31, %v4039_v57 }
 0xc99   : > { %v2377_v2 = vadd.f32 %v2365_v13, %v4039_v57 }
 0xc9d   : > { %v2338_v59 = vpop.f32.mrf.mxu2 }
 0xc9e   : > { %v2367_v44 = vpop.f32.mrf.mxu3  ;;  %v2339_v15 = vadd.f32 %v2338_v59, %v2280_v4 }
 0xc9f   : > { %v2368_v5 = vadd.f32 %v2367_v44, %v2309_v42 }
 0xca0   : > { %v2378_v63 = vadd.f32 %v2339_v15, %v4027_v37 }
 0xca1   : > { %v2379_v48 = vadd.f32 %v2368_v5, %v4027_v37 }
 0xca5   : > { %v2341_v52 = vpop.f32.mrf.mxu2 }
 0xca6   : > { %v2370_v7 = vpop.f32.mrf.mxu3  ;;  %v2342_v45 = vadd.f32 %v2341_v52, %v2283_v51 }
 0xca7   : > { %v2371_v0 = vadd.f32 %v2370_v7, %v2312_v58 }
 0xca8   : > { %v2380_v35 = vadd.f32 %v2342_v45, %v4029_v47 }
 0xca9   : > { %v2381_v14 = vadd.f32 %v2371_v0, %v4029_v47 }
 0xcad   : > { %v2344_v43 = vpop.f32.mrf.mxu2 }
 0xcae   : > { %v2345_v36 = vadd.f32 %v2344_v43, %v2286_v61  ;;  %v2373_v46 = vpop.f32.mrf.mxu3 }
 0xcaf   : > { %v2374_v33 = vadd.f32 %v2373_v46, %v2315_v62 }
 0xcb0   : > { %v2382_v38 = vadd.f32 %v2345_v36, %v4025_v32 }
 0xcb1   : > { %v2383_v17 = vadd.f32 %v2374_v33, %v4025_v32 }
 0xcb2   : > { %3571 = vtanh.f32 %v2382_v38 }
 0xcb3   : > { %3573 = vtanh.f32 %v2383_v17 }
 0xcb4   : > { %3575 = vtanh.f32 %v2380_v35 }
 0xcb5   : > { %3577 = vtanh.f32 %v2381_v14 }
 0xcb6   : > { %3579 = vtanh.f32 %v2378_v63 }
 0xcb7   : > { %3581 = vtanh.f32 %v2379_v48 }
 0xcb8   : > { %v3572_v53 = vpop.eup %3571  ;;  %3583 = vtanh.f32 %v2376_v9 }
 0xcb9   : > { %v3574_v54 = vpop.eup %3573  ;;  %3585 = vtanh.f32 %v2377_v2  ;;  %2404 = vmatpush.msrb.mxu0 %v3572_v53  ;;  %v3277_v2 = vld [vmem:[%s3913_s27 + $0x38] sm:$0xff]  ;;  %s3702_s27 = sshra.s32 %s2954_s16, 4  ;;  %s3703_s27 = int_to_ptr.hbm [resolvable:$true] %s3702_s27 }
 0xcba   : > { %v3576_v27 = vpop.eup %3575  ;;  %2433 = vmatpush.msrb.mxu1 %v3574_v54  ;;  %2535 = vst [vmem:[#allocation1] ss:$2 sm:$0xff] %v3277_v2  ;;  %s3704_s25 = scalar_lea.hbm %s3703_s27, 16  ;;  %p3709_p1 = scmp.lt.s32.totalorder %s3703_s27, %s5165_s12 }
 0xcbb   : > { %v3578_v23 = vpop.eup %3577  ;;  %2405 = vmatpush.msrb.mxu0 %v3576_v27  ;;  %p3705_p6 = scmp.ne.s32.totalorder %s3703_s27, %s3704_s25  ;;  %p3710_p2 = scmp.lt.s32.totalorder %s3708_s20, %s3704_s25 }
 0xcbc   : > { %v3580_v41 = vpop.eup %3579  ;;  %2434 = vmatpush.msrb.mxu1 %v3578_v23 }
 0xcbd   : > { %v3582_v1 = vpop.eup %3581  ;;  %2406 = vmatpush.msrb.mxu0 %v3580_v41  ;;  %v3651_v41 = vld [vmem:[%s5155_s2] sm:$0xff]  ;;  %p3706_p12 = pnand %p3705_p6, %p3875_p10  ;;  %p3711_p3 = por %p3710_p2, %p3709_p1 }
 0xcbe   : > { %v3584_v4 = vpop.eup %3583  ;;  %2435 = vmatpush.msrb.mxu1 %v3582_v1 }
 0xcbf   : > { %v3586_v42 = vpop.eup %3585  ;;  %2407 = vmatpush.msrb.mxu0 %v3584_v4  ;;  %p3707_p13 = pneg %p3706_p12 }
 0xcc0   : > { %2436 = vmatpush.msrb.mxu1 %v3586_v42  ;;  %3261 = vmatmul.msk.f32.vlgmr.msrb.gmra.mxu0 %vm597_vm0, %v4506_v60 }
 0xcc1   : > { %3265 = vmatmul.msk.f32.vlgmr.msrb.gmra.mxu1 %vm597_vm0, %v4506_v60  ;;  %v2536_v27 = vld.sshfl [vmem:[#allocation1] sm:$0xff pattern:$0x75316420]  ;;  %v2537_v23 = vld.sshfl [vmem:[#allocation1 + $0x8] sm:$0xff pattern:$0x75316420]  ;;  %p3712_p4 = pnand %p3711_p3, %p3707_p13 }
 0xcc2   : > { %3278 = vmatpush.msk.msra.mxu0 %vm534_vm1, %v2536_v27  ;;  %3283 = vmatpush.msk.msra.mxu1 %vm534_vm1, %v2537_v23 }
 0xcc8   : > { %3262 = vmatmul.msk.f32.gmra.mxu0 %vm597_vm0, %v4647_v30 }
 0xcc9   : > { %3266 = vmatmul.msk.f32.gmra.mxu1 %vm597_vm0, %v4647_v30 }
 0xcd0   : > { %3263 = vmatmul.msk.f32.gmra.mxu0 %vm597_vm0, %v4656_v19 }
 0xcd1   : > { %3267 = vmatmul.msk.f32.gmra.mxu1 %vm597_vm0, %v4656_v19 }
 0xcd8   : > { %3264 = vmatmul.msk.f32.gmra.mxu0 %vm597_vm0, %v4665_v8 }
 0xcd9   : > { %3268 = vmatmul.msk.f32.gmra.mxu1 %vm597_vm0, %v4665_v8 }
 0xce0   : > { %3279 = vmatmul.msk.f32.vlgmr.msra.gmra.mxu0 %vm521_vm2, %v3651_v41 }
 0xce1   : > { %3284 = vmatmul.msk.f32.vlgmr.msra.gmra.mxu1 %vm521_vm2, %v3651_v41 }
 0xce8   : > { %3280 = vmatmul.msk.f32.gmra.mxu0 %vm521_vm2, %v4557_v55 }
 0xce9   : > { %3285 = vmatmul.msk.f32.gmra.mxu1 %vm521_vm2, %v4557_v55 }
 0xcf0   : > { %3281 = vmatmul.msk.f32.gmra.mxu0 %vm521_vm2, %v4566_v56 }
 0xcf1   : > { %3286 = vmatmul.msk.f32.gmra.mxu1 %vm521_vm2, %v4566_v56 }
 0xd3d   : > { %v2409_v59 = vpop.f32.mrf.mxu0 }
 0xd3e   : > { %v2438_v60 = vpop.f32.mrf.mxu1  ;;  %v2410_v46 = vadd.f32 %v2409_v59, %v4103_v39 }
 0xd3f   : > { %v2439_v5 = vadd.f32 %v2438_v60, %v4103_v39 }
 0xd45   : > { %v2412_v44 = vpop.f32.mrf.mxu0 }
 0xd46   : > { %v2441_v51 = vpop.f32.mrf.mxu1  ;;  %v2413_v15 = vadd.f32 %v2412_v44, %v4098_v34 }
 0xd47   : > { %v2442_v36 = vadd.f32 %v2441_v51, %v4098_v34 }
 0xd4d   : > { %v2415_v58 = vpop.f32.mrf.mxu0 }
 0xd4e   : > { %v2444_v52 = vpop.f32.mrf.mxu1  ;;  %v2416_v61 = vadd.f32 %v2415_v58, %v4094_v28 }
 0xd4f   : > { %v2445_v0 = vadd.f32 %v2444_v52, %v4094_v28 }
 0xd55   : > { %v2418_v7 = vpop.f32.mrf.mxu0 }
 0xd56   : > { %v2419_v45 = vadd.f32 %v2418_v7, %v4092_v25  ;;  %v2447_v62 = vpop.f32.mrf.mxu1 }
 0xd57   : > { %v2448_v43 = vadd.f32 %v2447_v62, %v4092_v25  ;;  %v3654_v62 = vld [vmem:[%s5154_s1 + $0x8] sm:$0xff] }
 0xd58   : > { %3587 = vtanh.f32 %v2419_v45  ;;  %v3653_v45 = vld [vmem:[%s5154_s1] sm:$0xff] }
 0xd59   : > { %3589 = vtanh.f32 %v2448_v43  ;;  %v3656_v43 = vld [vmem:[%s5154_s1 + $0x18] sm:$0xff] }
 0xd5a   : > { %3591 = vtanh.f32 %v2416_v61  ;;  %v3652_v61 = vld [vmem:[%s5155_s2 + $0x18] sm:$0xff] }
 0xd5b   : > { %3593 = vtanh.f32 %v2445_v0  ;;  %3282 = vmatmul.msk.f32.gmra.mxu0 %vm521_vm2, %v3652_v61  ;;  %3287 = vmatmul.msk.f32.gmra.mxu1 %vm521_vm2, %v3652_v61  ;;  %v3655_v0 = vld [vmem:[%s5154_s1 + $0x10] sm:$0xff] }
 0xd5c   : > { %3595 = vtanh.f32 %v2413_v15 }
 0xd5d   : > { %3597 = vtanh.f32 %v2442_v36  ;;  %v2559_v15 = vpop.f32.mrf.mxu0 }
 0xd5e   : > { %v3588_v33 = vpop.eup %3587  ;;  %3599 = vtanh.f32 %v2410_v46  ;;  %v2588_v36 = vpop.f32.mrf.mxu1 }
 0xd5f   : > { %v3590_v31 = vpop.eup %3589  ;;  %3601 = vtanh.f32 %v2439_v5  ;;  %2470 = vmatpush.msrb.mxu2 %v3588_v33 }
 0xd60   : > { %v3592_v35 = vpop.eup %3591  ;;  %2499 = vmatpush.msrb.mxu3 %v3590_v31 }
 0xd61   : > { %v3594_v38 = vpop.eup %3593  ;;  %2471 = vmatpush.msrb.mxu2 %v3592_v35 }
 0xd62   : > { %v3596_v13 = vpop.eup %3595  ;;  %2500 = vmatpush.msrb.mxu3 %v3594_v38 }
 0xd63   : > { %v3598_v14 = vpop.eup %3597  ;;  %2472 = vmatpush.msrb.mxu2 %v3596_v13 }
 0xd64   : > { %v3600_v17 = vpop.eup %3599  ;;  %2501 = vmatpush.msrb.mxu3 %v3598_v14 }
 0xd65   : > { %v3602_v63 = vpop.eup %3601  ;;  %2473 = vmatpush.msrb.mxu2 %v3600_v17  ;;  %v2562_v33 = vpop.f32.mrf.mxu0 }
 0xd66   : > { %2502 = vmatpush.msrb.mxu3 %v3602_v63  ;;  %3269 = vmatmul.msk.f32.vlgmr.msrb.gmra.mxu2 %vm597_vm0, %v4682_v29  ;;  %v2591_v31 = vpop.f32.mrf.mxu1 }
 0xd67   : > { %3273 = vmatmul.msk.f32.vlgmr.msrb.gmra.mxu3 %vm597_vm0, %v4682_v29 }
 0xd6d   : > { %v2565_v13 = vpop.f32.mrf.mxu0 }
 0xd6e   : > { %3270 = vmatmul.msk.f32.gmra.mxu2 %vm597_vm0, %v4691_v11  ;;  %v2594_v14 = vpop.f32.mrf.mxu1 }
 0xd6f   : > { %3274 = vmatmul.msk.f32.gmra.mxu3 %vm597_vm0, %v4691_v11 }
 0xd76   : > { %3271 = vmatmul.msk.f32.gmra.mxu2 %vm597_vm0, %v4700_v40 }
 0xd77   : > { %3275 = vmatmul.msk.f32.gmra.mxu3 %vm597_vm0, %v4700_v40 }
 0xd7e   : > { %3272 = vmatmul.msk.f32.gmra.mxu2 %vm597_vm0, %v4709_v21 }
 0xd7f   : > { %3276 = vmatmul.msk.f32.gmra.mxu3 %vm597_vm0, %v4709_v21 }
 0xdd8   : > { %v2597_v2 = vpop.f32.mrf.mxu1 }
 0xde9   : > { %v2475_v48 = vpop.f32.mrf.mxu2 }
 0xdea   : > { %v2504_v9 = vpop.f32.mrf.mxu3 }
 0xdf1   : > { %v2478_v53 = vpop.f32.mrf.mxu2 }
 0xdf2   : > { %v2507_v54 = vpop.f32.mrf.mxu3  ;;  %v2518_v52 = vadd.f32 %v2478_v53, %v4876_v16 }
 0xdf3   : > { %v2519_v55 = vadd.f32 %v2507_v54, %v4880_v12 }
 0xdf4   : > { %v5000_v56 = vadd.f32 %v2518_v52, %v4173_v20 }
 0xdf5   : > { %v5004_v12 = vadd.f32 %v2519_v55, %v4173_v20 }
 0xdf9   : > { %v2481_v1 = vpop.f32.mrf.mxu2 }
 0xdfa   : > { %v2510_v4 = vpop.f32.mrf.mxu3  ;;  %v2520_v59 = vadd.f32 %v2481_v1, %v4867_v6  ;;  %v2516_v6 = vadd.f32 %v2475_v48, %v4884_v22  ;;  %v2568_v48 = vpop.f32.mrf.mxu0 }
 0xdfb   : > { %v2521_v51 = vadd.f32 %v2510_v4, %v4872_v49  ;;  %v2517_v49 = vadd.f32 %v2504_v9, %v4888_v26 }
 0xdfc   : > { %v5008_v22 = vadd.f32 %v2516_v6, %v4185_v24 }
 0xdfd   : > { %v4996_v16 = vadd.f32 %v2521_v51, %v4164_v10  ;;  %v5012_v26 = vadd.f32 %v2517_v49, %v4185_v24 }
 0xe01   : > { %v2484_v42 = vpop.f32.mrf.mxu2 }
 0xe02   : > { %v2522_v60 = vadd.f32 %v2484_v42, %v4855_v50  ;;  %v2513_v44 = vpop.f32.mrf.mxu3 }
 0xe03   : > { %v2523_v58 = vadd.f32 %v2513_v44, %v4863_v18  ;;  %v4991_v18 = vadd.f32 %v2520_v59, %v4164_v10 }
 0xe04   : > { %v4979_v7 = vadd.f32 %v2522_v60, %v4155_v3 }
 0xe05   : > { %v4987_v50 = vadd.f32 %v2523_v58, %v4155_v3 }
 0xe06   : > { %2612 = vmatpush.msra.mxu2 %v4979_v7 }
 0xe07   : > { %2641 = vmatpush.msra.mxu3 %v4987_v50 }
 0xe08   : > { %2613 = vmatpush.msra.mxu2 %v4991_v18 }
 0xe09   : > { %2642 = vmatpush.msra.mxu3 %v4996_v16 }
 0xe0a   : > { %2614 = vmatpush.msra.mxu2 %v5000_v56 }
 0xe0b   : > { %2643 = vmatpush.msra.mxu3 %v5004_v12 }
 0xe0c   : > { %2615 = vmatpush.msra.mxu2 %v5008_v22 }
 0xe0d   : > { %2644 = vmatpush.msra.mxu3 %v5012_v26  ;;  %3288 = vmatmul.msk.f32.vlgmr.msra.gmra.mxu2 %vm597_vm0, %v3653_v45 }
 0xe0e   : > { %3292 = vmatmul.msk.f32.vlgmr.msra.gmra.mxu3 %vm597_vm0, %v3653_v45 }
 0xe15   : > { %3289 = vmatmul.msk.f32.gmra.mxu2 %vm597_vm0, %v3654_v62 }
 0xe16   : > { %3293 = vmatmul.msk.f32.gmra.mxu3 %vm597_vm0, %v3654_v62 }
 0xe1d   : > { %3290 = vmatmul.msk.f32.gmra.mxu2 %vm597_vm0, %v3655_v0 }
 0xe1e   : > { %3294 = vmatmul.msk.f32.gmra.mxu3 %vm597_vm0, %v3655_v0 }
 0xe25   : > { %3291 = vmatmul.msk.f32.gmra.mxu2 %vm597_vm0, %v3656_v43 }
 0xe26   : > { %3295 = vmatmul.msk.f32.gmra.mxu3 %vm597_vm0, %v3656_v43 }
 0xe90   : > { %v2617_v46 = vpop.f32.mrf.mxu2 }
 0xe91   : > { %v2646_v5 = vpop.f32.mrf.mxu3  ;;  %v2618_v42 = vadd.f32 %v2617_v46, %v2559_v15 }
 0xe92   : > { %v2647_v44 = vadd.f32 %v2646_v5, %v2588_v36 }
 0xe93   : > { %v2658_v6 = vadd.f32 %v2618_v42, %v4039_v57 }
 0xe94   : > { %v2659_v49 = vadd.f32 %v2647_v44, %v4039_v57  ;;  %v3657_v57 = vld [vmem:[%s5157_s4] sm:$0xff] }
 0xe98   : > { %v2620_v35 = vpop.f32.mrf.mxu2 }
 0xe99   : > { %v2649_v38 = vpop.f32.mrf.mxu3  ;;  %v2621_v27 = vadd.f32 %v2620_v35, %v2562_v33 }
 0xe9a   : > { %v2650_v1 = vadd.f32 %v2649_v38, %v2591_v31 }
 0xe9b   : > { %v2660_v52 = vadd.f32 %v2621_v27, %v4027_v37 }
 0xe9c   : > { %v2661_v55 = vadd.f32 %v2650_v1, %v4027_v37 }
 0xea0   : > { %v2623_v17 = vpop.f32.mrf.mxu2 }
 0xea1   : > { %v2652_v63 = vpop.f32.mrf.mxu3  ;;  %v2624_v9 = vadd.f32 %v2623_v17, %v2565_v13 }
 0xea2   : > { %v2653_v53 = vadd.f32 %v2652_v63, %v2594_v14 }
 0xea3   : > { %v2662_v59 = vadd.f32 %v2624_v9, %v4029_v47 }
 0xea4   : > { %v2663_v51 = vadd.f32 %v2653_v53, %v4029_v47 }
 0xea8   : > { %v2626_v54 = vpop.f32.mrf.mxu2 }
 0xea9   : > { %v2627_v23 = vadd.f32 %v2626_v54, %v2568_v48  ;;  %v2655_v41 = vpop.f32.mrf.mxu3 }
 0xeaa   : > { %v2656_v4 = vadd.f32 %v2655_v41, %v2597_v2 }
 0xeab   : > { %v2664_v60 = vadd.f32 %v2627_v23, %v4025_v32 }
 0xeac   : > { %v2665_v58 = vadd.f32 %v2656_v4, %v4025_v32 }
 0xead   : > { %3603 = vtanh.f32 %v2664_v60 }
 0xeae   : > { %3605 = vtanh.f32 %v2665_v58 }
 0xeaf   : > { %3607 = vtanh.f32 %v2662_v59 }
 0xeb0   : > { %3609 = vtanh.f32 %v2663_v51 }
 0xeb1   : > { %3611 = vtanh.f32 %v2660_v52 }
 0xeb2   : > { %3613 = vtanh.f32 %v2661_v55 }
 0xeb3   : > { %v3604_v61 = vpop.eup %3603  ;;  %3615 = vtanh.f32 %v2658_v6 }
 0xeb4   : > { %v3606_v45 = vpop.eup %3605  ;;  %3617 = vtanh.f32 %v2659_v49  ;;  %2686 = vmatpush.msrb.mxu0 %v3604_v61  ;;  %v2821_v49 = vpop.permute.xlu1 %2820 }
 0xeb5   : > { %v3608_v32 = vpop.eup %3607  ;;  %2715 = vmatpush.msrb.mxu1 %v3606_v45 }
 0xeb6   : > { %v3610_v47 = vpop.eup %3609  ;;  %2687 = vmatpush.msrb.mxu0 %v3608_v32 }
 0xeb7   : > { %v3612_v62 = vpop.eup %3611  ;;  %2716 = vmatpush.msrb.mxu1 %v3610_v47 }
 0xeb8   : > { %v3614_v37 = vpop.eup %3613  ;;  %2688 = vmatpush.msrb.mxu0 %v3612_v62 }
 0xeb9   : > { %v3616_v0 = vpop.eup %3615  ;;  %2717 = vmatpush.msrb.mxu1 %v3614_v37 }
 0xeba   : > { %v3618_v43 = vpop.eup %3617  ;;  %2689 = vmatpush.msrb.mxu0 %v3616_v0 }
 0xebb   : > { %2718 = vmatpush.msrb.mxu1 %v3618_v43  ;;  %3296 = vmatmul.msk.f32.vlgmr.msrb.gmra.mxu0 %vm597_vm0, %v3657_v57 }
 0xebc   : > { %3300 = vmatmul.msk.f32.vlgmr.msrb.gmra.mxu1 %vm597_vm0, %v3657_v57  ;;  %v2884_v57 = vld [vmem:[%s5163_s10] sm:$0xff] }
 0xec3   : > { %3297 = vmatmul.msk.f32.gmra.mxu0 %vm597_vm0, %v4647_v30 }
 0xec4   : > { %3301 = vmatmul.msk.f32.gmra.mxu1 %vm597_vm0, %v4647_v30 }
 0xecb   : > { %3298 = vmatmul.msk.f32.gmra.mxu0 %vm597_vm0, %v4656_v19 }
 0xecc   : > { %3302 = vmatmul.msk.f32.gmra.mxu1 %vm597_vm0, %v4656_v19 }
 0xed3   : > { %3299 = vmatmul.msk.f32.gmra.mxu0 %vm597_vm0, %v4665_v8 }
 0xed4   : > { %3303 = vmatmul.msk.f32.gmra.mxu1 %vm597_vm0, %v4665_v8 }
 0xf38   : > { %v2691_v15 = vpop.f32.mrf.mxu0 }
 0xf39   : > { %v2720_v36 = vpop.f32.mrf.mxu1  ;;  %v2692_v63 = vadd.f32 %v2691_v15, %v4103_v39 }
 0xf3a   : > { %v2721_v48 = vadd.f32 %v2720_v36, %v4103_v39  ;;  %v2889_v36 = vpop.permute.xlu2 %2888 }
 0xf40   : > { %v2694_v46 = vpop.f32.mrf.mxu0 }
 0xf41   : > { %v2723_v5 = vpop.f32.mrf.mxu1  ;;  %v2695_v17 = vadd.f32 %v2694_v46, %v4098_v34 }
 0xf42   : > { %v2724_v8 = vadd.f32 %v2723_v5, %v4098_v34 }
 0xf48   : > { %v2697_v33 = vpop.f32.mrf.mxu0 }
 0xf49   : > { %v2726_v31 = vpop.f32.mrf.mxu1  ;;  %v2698_v30 = vadd.f32 %v2697_v33, %v4094_v28 }
 0xf4a   : > { %v2727_v19 = vadd.f32 %v2726_v31, %v4094_v28 }
 0xf50   : > { %v2700_v35 = vpop.f32.mrf.mxu0 }
 0xf51   : > { %v2701_v38 = vadd.f32 %v2700_v35, %v4092_v25  ;;  %v2729_v13 = vpop.f32.mrf.mxu1 }
 0xf52   : > { %v2730_v14 = vadd.f32 %v2729_v13, %v4092_v25 }
 0xf53   : > { %3619 = vtanh.f32 %v2701_v38 }
 0xf54   : > { %3621 = vtanh.f32 %v2730_v14 }
 0xf55   : > { %3623 = vtanh.f32 %v2698_v30 }
 0xf56   : > { %3625 = vtanh.f32 %v2727_v19 }
 0xf57   : > { %3627 = vtanh.f32 %v2695_v17 }
 0xf58   : > { %3629 = vtanh.f32 %v2724_v8 }
 0xf59   : > { %v3620_v9 = vpop.eup %3619  ;;  %3631 = vtanh.f32 %v2692_v63 }
 0xf5a   : > { %v3622_v2 = vpop.eup %3621  ;;  %3633 = vtanh.f32 %v2721_v48  ;;  %2752 = vmatpush.msrb.mxu2 %v3620_v9 }
 0xf5b   : > { %v3624_v25 = vpop.eup %3623  ;;  %2781 = vmatpush.msrb.mxu3 %v3622_v2 }
 0xf5c   : > { %v3626_v28 = vpop.eup %3625  ;;  %2753 = vmatpush.msrb.mxu2 %v3624_v25 }
 0xf5d   : > { %v3628_v53 = vpop.eup %3627  ;;  %2782 = vmatpush.msrb.mxu3 %v3626_v28 }
 0xf5e   : > { %v3630_v34 = vpop.eup %3629  ;;  %2754 = vmatpush.msrb.mxu2 %v3628_v53 }
 0xf5f   : > { %v3632_v54 = vpop.eup %3631  ;;  %2783 = vmatpush.msrb.mxu3 %v3630_v34 }
 0xf60   : > { %v3634_v27 = vpop.eup %3633  ;;  %2755 = vmatpush.msrb.mxu2 %v3632_v54 }
 0xf61   : > { %2784 = vmatpush.msrb.mxu3 %v3634_v27  ;;  %3304 = vmatmul.msk.f32.vlgmr.msrb.gmra.mxu2 %vm597_vm0, %v4682_v29 }
 0xf62   : > { %3308 = vmatmul.msk.f32.vlgmr.msrb.gmra.mxu3 %vm597_vm0, %v4682_v29 }
 0xf69   : > { %3305 = vmatmul.msk.f32.gmra.mxu2 %vm597_vm0, %v4691_v11 }
 0xf6a   : > { %3309 = vmatmul.msk.f32.gmra.mxu3 %vm597_vm0, %v4691_v11 }
 0xf71   : > { %3306 = vmatmul.msk.f32.gmra.mxu2 %vm597_vm0, %v4700_v40 }
 0xf72   : > { %3310 = vmatmul.msk.f32.gmra.mxu3 %vm597_vm0, %v4700_v40 }
 0xf79   : > { %3307 = vmatmul.msk.f32.gmra.mxu2 %vm597_vm0, %v4709_v21 }
 0xf7a   : > { %3311 = vmatmul.msk.f32.gmra.mxu3 %vm597_vm0, %v4709_v21 }
 0xfe4   : > { %v2757_v39 = vpop.f32.mrf.mxu2 }
 0xfe5   : > { %v2786_v29 = vpop.f32.mrf.mxu3  ;;  %v2798_v55 = vadd.f32 %v2757_v39, %v5008_v22 }
 0xfec   : > { %v2760_v23 = vpop.f32.mrf.mxu2 }
 0xfed   : > { %v2789_v41 = vpop.f32.mrf.mxu3  ;;  %v2800_v51 = vadd.f32 %v2760_v23, %v5000_v56  ;;  %v2806_v56 = vadd.f32 %v2798_v55, %v4185_v24 }
 0xfee   : > { %v2801_v58 = vadd.f32 %v2789_v41, %v5004_v12 }
 0xff4   : > { %v2763_v1 = vpop.f32.mrf.mxu2 }
 0xff5   : > { %v2792_v4 = vpop.f32.mrf.mxu3  ;;  %v2802_v11 = vadd.f32 %v2763_v1, %v4991_v18 }
 0xff6   : > { %v2803_v40 = vadd.f32 %v2792_v4, %v4996_v16  ;;  %v2809_v16 = vadd.f32 %v2801_v58, %v4173_v20 }
 0xff7   : > { %v2810_v6 = vadd.f32 %v2802_v11, %v4164_v10 }
 0xff8   : > { %v2811_v18 = vadd.f32 %v2803_v40, %v4164_v10  ;;  %v2815_v10 = vld [vmem:[%s5161_s8 + $0x8] sm:$0xff] }
 0xffc   : > { %v2766_v42 = vpop.f32.mrf.mxu2 }
 0xffd   : > { %v2804_v59 = vadd.f32 %v2766_v42, %v4979_v7  ;;  %v2795_v60 = vpop.f32.mrf.mxu3  ;;  %v2799_v7 = vadd.f32 %v2786_v29, %v5012_v26  ;;  %v2826_v26 = vpop.permute.xlu0 %2825 }
 0xffe   : > { %v2805_v44 = vadd.f32 %v2795_v60, %v4987_v50  ;;  %v2808_v50 = vadd.f32 %v2800_v51, %v4173_v20 }
 0xfff   : > { %v2812_v21 = vadd.f32 %v2804_v59, %v4155_v3  ;;  %v2807_v12 = vadd.f32 %v2799_v7, %v4185_v24 }
0x1000   : > { %v2813_v52 = vadd.f32 %v2805_v44, %v4155_v3  ;;  %v2814_v3 = vld [vmem:[%s5161_s8] sm:$0xff] }
0x1001   : > { %2846 = vmatpush.msra.mxu0 %v2812_v21 }
0x1002   : > { %2869 = vmatpush.msra.mxu1 %v2813_v52 }
0x1003   : > { %2847 = vmatpush.msra.mxu0 %v2810_v6 }
0x1004   : > { %2870 = vmatpush.msra.mxu1 %v2811_v18 }
0x1005   : > { %2848 = vmatpush.msra.mxu0 %v2808_v50 }
0x1006   : > { %2871 = vmatpush.msra.mxu1 %v2809_v16 }
0x1007   : > { %2849 = vmatpush.msra.mxu0 %v2806_v56 }
0x1008   : > { %2872 = vmatpush.msra.mxu1 %v2807_v12  ;;  %3312 = vmatmul.msk.f32.vlgmr.msra.gmra.mxu0 %vm597_vm0, %v2814_v3 }
0x1009   : > { %3314 = vmatmul.msk.f32.vlgmr.msra.gmra.mxu1 %vm597_vm0, %v2814_v3 }
0x1010   : > { %3313 = vmatmul.msk.f32.gmra.mxu0 %vm597_vm0, %v2815_v10 }
0x1011   : > { %3315 = vmatmul.msk.f32.gmra.mxu1 %vm597_vm0, %v2815_v10 }
0x1085   : > { %v2851_v20 = vpop.f32.mrf.mxu0 }
0x1086   : > { %v2874_v22 = vpop.f32.mrf.mxu1  ;;  %v2852_v61 = vadd.f32 %v2851_v20, %v2821_v49 }
0x1087   : > { %v2875_v47 = vadd.f32 %v2874_v22, %v2821_v49 }
0x1088   : > { %v2880_v43 = vmax.f32 %v2852_v61, 0.0 }
0x1089   : > { %v2881_v15 = vmax.f32 %v2875_v47, 0.0 }
0x108d   : > { %v2854_v24 = vpop.f32.mrf.mxu0 }
0x108e   : > { %v2855_v45 = vadd.f32 %v2854_v24, %v2826_v26  ;;  %v2877_v32 = vpop.f32.mrf.mxu1 }
0x108f   : > { %v2878_v62 = vadd.f32 %v2877_v32, %v2826_v26 }
0x1090   : > { %v2882_v37 = vmax.f32 %v2855_v45, 0.0 }
0x1091   : > { %v2883_v0 = vmax.f32 %v2878_v62, 0.0 }
0x1092   : > { %2909 = vmatpush.msra.mxu2 %v2882_v37 }
0x1093   : > { %2929 = vmatpush.msra.mxu3 %v2883_v0 }
0x1094   : > { %2910 = vmatpush.msra.mxu2 %v2880_v43 }
0x1095   : > { %2930 = vmatpush.msra.mxu3 %v2881_v15  ;;  %3316 = vmatmul.msk.f32.vlgmr.msra.gmra.mxu2 %vm2891_vm3, %v2884_v57 }
0x1096   : > { %3317 = vmatmul.msk.f32.vlgmr.msra.gmra.mxu3 %vm2891_vm3, %v2884_v57 }
0x1118   : > { %v2912_v46 = vpop.f32.mrf.mxu2 }
0x1119   : > { %v2913_v5 = vadd.f32 %v2912_v46, %v2889_v36  ;;  %v2932_v33 = vpop.f32.mrf.mxu3 }
0x111a   : > { %v2933_v31 = vadd.f32 %v2932_v33, %v2889_v36 }
0x111b   : > { %2935 = vst [vmem:[%s433_s21] sm:$0xff] %v2913_v5 }
0x111c   : > { %2936 = vst [vmem:[%s433_s21 + $0x8] sm:$0xff] %v2933_v31 }
0x111d   : > { %3715 = shalt.err (!%p3712_p4)
}
0x111e   : > { %3327 = dma.vmem_to_hbm [thread:$0]  (%p3875_p10), %s2952_s30, 256, %s2954_s16, %s2938_s26  }
0x111f PF: > { %s5185_s18 = sld [smem:[#allocation8_spill]]  ;;  %p3338_p5 = scmp.ge.s32.totalorder %s3754_s24, 2 }
0x1121   : > { %p3334_p7 = pnand %p3338_p5, %p3879_p11 }
0x1123   : > { %p3335_p8 = pneg %p3334_p7 }
0x1125   : > { %s2965_s23 = sand.u32 1, %s5185_s18  }
0x1126   : > { %s2966_s15 = scalar_lea.sflag [#allocation4], %s2965_s23 }
0x1127   : > { %3737 = dma.done.wait (%p3335_p8), %s2966_s15, 256  }
0x1128   : > { %3739 = vsyncadd (%p3335_p8), %s2966_s15, 4294967040  ;;  %s5187_s24 = sld [smem:[#allocation10_spill]]  ;;  %s5190_s21 = smov %s3746_s22 }
0x1129   : > { %s5188_s27 = sld [smem:[#allocation9_spill]] }
0x112a   : > { %s5189_s23 = sld [smem:[#allocation11_spill]] }
0x112e   : > { %p25_p9 = scmp.ge.s32.totalorder %s5187_s24, 6  }
0x112f   : > { %s5191_s22 = smov %s5188_s27 }
0x1130   :  { %27 = sbr.rel (!%p25_p9) target bundleno = 5 (0x5), region = 120 }
0x1135   :  { %2972 = vsyncpa [#allocation3], 1 }
0x1136   :  { %2974 = vsyncpa [#allocation3 + $0x1], 1 }
0x1137   :  { %2975 = vsyncpa [#allocation4], 1 }
0x1138   :  { %2977 = vsyncpa [#allocation4 + $0x1], 1 }

</bundles_post_ra>
